<compile_context>
chip_gen: v6e
topology: v6e:2x2x1
jax: 0.10.0
libtpu: 0.0.40
codegen_flags: <defaults>
</compile_context>

<pallas_src>
import jax
import jax.numpy as jnp
from jax.experimental import pallas as pl
from jax.experimental.pallas import tpu as pltpu

# ----- model dims (small, consistent with the module) -----
T = 8            # sequence length
B = 2            # batch
CIN = 16         # input_dim
D = 32           # d_model
FF = 64          # feedforward_dim
NHEAD = 4
HEAD_DIM = D // NHEAD
NUM_LAYERS = 2
NTOT = T * B     # flattened token count (rows), row r = (t = r // B, b = r % B)
EPS = 1e-5       # PyTorch LayerNorm default


def _layer_norm(x, w, b):
    # single-pass variance: E[x^2] - mean^2
    mean = jnp.mean(x, axis=-1, keepdims=True)
    var = jnp.mean(x * x, axis=-1, keepdims=True) - mean * mean
    return (x - mean) * jax.lax.rsqrt(var + EPS) * w + b


def itrm_kernel(x_ref, aff_wT_ref, aff_b_ref,
                qkv_wT_ref, qkv_b_ref, out_wT_ref, out_b_ref,
                l1_wT_ref, l1_b_ref, l2_wT_ref, l2_b_ref,
                n1w_ref, n1b_ref, n2w_ref, n2b_ref,
                hmask_ref, amask_ref,
                o_ref):
    x = x_ref[...]                                                    # (NTOT, CIN)

    # affine_matrix: Linear(input_dim, d_model)  (weights pre-transposed: (CIN, D))
    h = jnp.dot(x, aff_wT_ref[...],
                preferred_element_type=jnp.float32) + aff_b_ref[...]  # (NTOT, D)

    hmask = hmask_ref[...]   # (NHEAD*NTOT, D)   0/1: row-block h keeps head-h columns
    amask = amask_ref[...]   # (NHEAD*NTOT, NTOT) additive: 0 same batch, -1e9 cross batch

    for l in range(NUM_LAYERS):                  # static unroll over 2 encoder layers
        # ---- MultiheadAttention (self-attention), fused QKV ----
        qkv = jnp.dot(h, qkv_wT_ref[l],
                      preferred_element_type=jnp.float32) + qkv_b_ref[l]  # (NTOT, 3D)
        q = qkv[:, 0:D]          # already scaled by 1/sqrt(head_dim) (folded in wrapper)
        k = qkv[:, D:2 * D]
        v = qkv[:, 2 * D:3 * D]

        # Block-diagonal Q slab: row block h holds q restricted to head-h columns.
        q_bd = jnp.concatenate([q] * NHEAD, axis=0) * hmask               # (NHEAD*NTOT, D)

        # All (batch, head, query, key) scores in one matmul; mask cross-batch pairs.
        scores = jnp.dot(q_bd, k.T,
                         preferred_element_type=jnp.float32) + amask      # (NHEAD*NTOT, NTOT)
        scores = scores - jnp.max(scores, axis=-1, keepdims=True)
        p = jnp.exp(scores)
        p = p * pl.reciprocal(jnp.sum(p, axis=-1, keepdims=True), approx=True)

        # One PV matmul for all heads; keep head-h columns of row-block h, fold blocks.
        o_big = jnp.dot(p, v, preferred_element_type=jnp.float32) * hmask  # (NHEAD*NTOT, D)
        attn = (o_big[0 * NTOT:1 * NTOT] + o_big[1 * NTOT:2 * NTOT]
                + o_big[2 * NTOT:3 * NTOT] + o_big[3 * NTOT:4 * NTOT])     # (NTOT, D)
        attn = jnp.dot(attn, out_wT_ref[l],
                       preferred_element_type=jnp.float32) + out_b_ref[l]

        # residual + norm1   (dropout1 == identity at inference)
        h = _layer_norm(h + attn, n1w_ref[l], n1b_ref[l])

        # ---- feed-forward: linear2(relu(linear1(h))) ----
        ff = jnp.maximum(
            jnp.dot(h, l1_wT_ref[l], preferred_element_type=jnp.float32) + l1_b_ref[l], 0.0)
        ff = jnp.dot(ff, l2_wT_ref[l], preferred_element_type=jnp.float32) + l2_b_ref[l]

        # residual + norm2   (dropout2 == identity at inference)
        h = _layer_norm(h + ff, n2w_ref[l], n2b_ref[l])

    o_ref[...] = h.astype(o_ref.dtype)


def _full_spec(shape):
    zeros = (0,) * len(shape)
    return pl.BlockSpec(shape, lambda i, zeros=zeros: zeros)   # whole array, single grid step


def _prep(p):
    """Pre-transpose weights, fold the attention scaling into Q, and build constant masks."""
    scaling = 1.0 / (HEAD_DIM ** 0.5)
    # scale the Q third of the fused projection (weights and bias) at trace time
    qscale = jnp.concatenate(
        [jnp.full((1, D), scaling, jnp.float32), jnp.ones((1, 2 * D), jnp.float32)], axis=1)

    # 0/1 head mask: row block h (rows h*NTOT:(h+1)*NTOT) keeps columns h*HEAD_DIM:(h+1)*HEAD_DIM
    row_head = (jnp.arange(NHEAD * NTOT)[:, None] // NTOT)
    col_head = (jnp.arange(D)[None, :] // HEAD_DIM)
    hmask = (row_head == col_head).astype(jnp.float32)                      # (NHEAD*NTOT, D)

    # additive cross-batch mask: flattened row r has batch r % B
    row_b = (jnp.arange(NHEAD * NTOT) % NTOT) % B
    col_b = jnp.arange(NTOT) % B
    amask = jnp.where(row_b[:, None] == col_b[None, :], 0.0, -1e9).astype(jnp.float32)

    return dict(
        aff_wT=p["aff_w"].T,                                   # (CIN, D)
        aff_b=p["aff_b"],                                      # (1, D)
        qkv_wT=jnp.transpose(p["in_w"], (0, 2, 1)) * qscale,   # (L, D, 3D), Q part pre-scaled
        qkv_b=p["in_b"] * qscale,                              # (L, 1, 3D)
        out_wT=jnp.transpose(p["out_w"], (0, 2, 1)),           # (L, D, D)
        out_b=p["out_b"],
        l1_wT=jnp.transpose(p["l1_w"], (0, 2, 1)),             # (L, D, FF)
        l1_b=p["l1_b"],
        l2_wT=jnp.transpose(p["l2_w"], (0, 2, 1)),             # (L, FF, D)
        l2_b=p["l2_b"],
        n1_w=p["n1_w"], n1_b=p["n1_b"], n2_w=p["n2_w"], n2_b=p["n2_b"],
        hmask=hmask, amask=amask,
    )


def internal_temporal_relation_forward(feature, p):
    """feature: (T, B, CIN) float32 (PyTorch seq-first layout). Returns (T, B, D)."""
    x = feature.reshape(NTOT, CIN)              # free reshape; row r = (t=r//B, b=r%B)
    w = _prep(p)
    inputs = [x, w["aff_wT"], w["aff_b"],
              w["qkv_wT"], w["qkv_b"], w["out_wT"], w["out_b"],
              w["l1_wT"], w["l1_b"], w["l2_wT"], w["l2_b"],
              w["n1_w"], w["n1_b"], w["n2_w"], w["n2_b"],
              w["hmask"], w["amask"]]
    out = pl.pallas_call(
        itrm_kernel,
        out_shape=jax.ShapeDtypeStruct((NTOT, D), jnp.float32),
        grid=(1,),                               # single step: whole batch in one invocation
        in_specs=[_full_spec(a.shape) for a in inputs],
        out_specs=pl.BlockSpec((NTOT, D), lambda i: (0, 0)),
        compiler_params=pltpu.CompilerParams(dimension_semantics=("arbitrary",)),
    )(*inputs)
    return out.reshape(T, B, D)


def init_params(key):
    keys = jax.random.split(key, 10)

    def w(k, shape, scale=0.05):
        return (scale * jax.random.normal(k, shape)).astype(jnp.float32)

    return dict(
        aff_w=w(keys[0], (D, CIN)),                       # nn.Linear(input_dim, d_model).weight
        aff_b=w(keys[1], (1, D)),                         # .bias
        in_w=w(keys[2], (NUM_LAYERS, 3 * D, D)),          # MHA in_proj_weight per layer
        in_b=w(keys[3], (NUM_LAYERS, 1, 3 * D)),          # MHA in_proj_bias
        out_w=w(keys[4], (NUM_LAYERS, D, D)),             # MHA out_proj.weight
        out_b=w(keys[5], (NUM_LAYERS, 1, D)),             # MHA out_proj.bias
        l1_w=w(keys[6], (NUM_LAYERS, FF, D)),             # linear1
        l1_b=w(keys[7], (NUM_LAYERS, 1, FF)),
        l2_w=w(keys[8], (NUM_LAYERS, D, FF)),             # linear2
        l2_b=w(keys[9], (NUM_LAYERS, 1, D)),
        n1_w=jnp.ones((NUM_LAYERS, 1, D), jnp.float32),   # LayerNorm init (weight=1, bias=0)
        n1_b=jnp.zeros((NUM_LAYERS, 1, D), jnp.float32),
        n2_w=jnp.ones((NUM_LAYERS, 1, D), jnp.float32),
        n2_b=jnp.zeros((NUM_LAYERS, 1, D), jnp.float32),
    )


def reference_forward(feature, p):
    """Pure-JAX reference mirroring the PyTorch module (eval mode)."""
    def ln(x, w, b):
        mean = jnp.mean(x, axis=-1, keepdims=True)
        var = jnp.mean((x - mean) ** 2, axis=-1, keepdims=True)
        return (x - mean) * jax.lax.rsqrt(var + EPS) * w + b

    x = jnp.transpose(feature, (1, 0, 2))                         # (B, T, CIN)
    h = x @ p["aff_w"].T + p["aff_b"][0]
    scaling = 1.0 / (HEAD_DIM ** 0.5)
    for l in range(NUM_LAYERS):
        in_w = p["in_w"][l]
        in_b = p["in_b"][l][0]
        q = (h @ in_w[:D].T + in_b[:D]).reshape(B, T, NHEAD, HEAD_DIM) * scaling
        k = (h @ in_w[D:2 * D].T + in_b[D:2 * D]).reshape(B, T, NHEAD, HEAD_DIM)
        v = (h @ in_w[2 * D:].T + in_b[2 * D:]).reshape(B, T, NHEAD, HEAD_DIM)
        sc = jnp.einsum("bqhd,bkhd->bhqk", q, k)
        pr = jax.nn.softmax(sc, axis=-1)
        attn = jnp.einsum("bhqk,bkhd->bqhd", pr, v).reshape(B, T, D)
        attn = attn @ p["out_w"][l].T + p["out_b"][l][0]
        h = ln(h + attn, p["n1_w"][l][0], p["n1_b"][l][0])
        ff = jax.nn.relu(h @ p["l1_w"][l].T + p["l1_b"][l][0])
        ff = ff @ p["l2_w"][l].T + p["l2_b"][l][0]
        h = ln(h + ff, p["n2_w"][l][0], p["n2_b"][l][0])
    return jnp.transpose(h, (1, 0, 2))


if __name__ == "__main__":
    key = jax.random.PRNGKey(0)
    k_feat, k_param = jax.random.split(key)
    feature = jax.random.normal(k_feat, (T, B, CIN), dtype=jnp.float32)  # (seq, batch, input_dim)
    params = init_params(k_param)

    out = internal_temporal_relation_forward(feature, params)
    out = jax.block_until_ready(out)

    ref = reference_forward(feature, params)
    assert out.shape == (T, B, D)
    # tolerance leaves margin for the approx softmax reciprocal / single-pass LN variance
    assert jnp.allclose(out, ref, rtol=2e-3, atol=2e-3), "Pallas kernel mismatch vs JAX reference"
    print("KERNEL_OK")
</pallas_src>

<mosaic_0001>
module attributes {stable_mosaic.version = 11 : i64} {
  func.func @itrm_kernel(%arg0: i32, %arg1: memref<16x16xf32, #tpu.memory_space<vmem>>, %arg2: memref<16x32xf32, #tpu.memory_space<vmem>>, %arg3: memref<1x32xf32, #tpu.memory_space<vmem>>, %arg4: memref<2x32x96xf32, #tpu.memory_space<vmem>>, %arg5: memref<2x1x96xf32, #tpu.memory_space<vmem>>, %arg6: memref<2x32x32xf32, #tpu.memory_space<vmem>>, %arg7: memref<2x1x32xf32, #tpu.memory_space<vmem>>, %arg8: memref<2x32x64xf32, #tpu.memory_space<vmem>>, %arg9: memref<2x1x64xf32, #tpu.memory_space<vmem>>, %arg10: memref<2x64x32xf32, #tpu.memory_space<vmem>>, %arg11: memref<2x1x32xf32, #tpu.memory_space<vmem>>, %arg12: memref<2x1x32xf32, #tpu.memory_space<vmem>>, %arg13: memref<2x1x32xf32, #tpu.memory_space<vmem>>, %arg14: memref<2x1x32xf32, #tpu.memory_space<vmem>>, %arg15: memref<2x1x32xf32, #tpu.memory_space<vmem>>, %arg16: memref<64x32xf32, #tpu.memory_space<vmem>>, %arg17: memref<64x16xf32, #tpu.memory_space<vmem>>, %arg18: memref<16x32xf32, #tpu.memory_space<vmem>>) attributes {dimension_semantics = [#tpu.dimension_semantics<arbitrary>], iteration_bounds = array<i64: 1>, scalar_prefetch = 0 : i64, scratch_operands = 0 : i64, tpu.core_type = #tpu.core_type<tc>, window_params = [{pipeline_mode = #tpu.pipeline_mode<synchronous>, transform_indices = @transform_0, window_bounds = array<i64: 16, 16>}, {pipeline_mode = #tpu.pipeline_mode<synchronous>, transform_indices = @transform_1, window_bounds = array<i64: 16, 32>}, {pipeline_mode = #tpu.pipeline_mode<synchronous>, transform_indices = @transform_2, window_bounds = array<i64: 1, 32>}, {pipeline_mode = #tpu.pipeline_mode<synchronous>, transform_indices = @transform_3, window_bounds = array<i64: 2, 32, 96>}, {pipeline_mode = #tpu.pipeline_mode<synchronous>, transform_indices = @transform_4, window_bounds = array<i64: 2, 1, 96>}, {pipeline_mode = #tpu.pipeline_mode<synchronous>, transform_indices = @transform_5, window_bounds = array<i64: 2, 32, 32>}, {pipeline_mode = #tpu.pipeline_mode<synchronous>, transform_indices = @transform_6, window_bounds = array<i64: 2, 1, 32>}, {pipeline_mode = #tpu.pipeline_mode<synchronous>, transform_indices = @transform_7, window_bounds = array<i64: 2, 32, 64>}, {pipeline_mode = #tpu.pipeline_mode<synchronous>, transform_indices = @transform_8, window_bounds = array<i64: 2, 1, 64>}, {pipeline_mode = #tpu.pipeline_mode<synchronous>, transform_indices = @transform_9, window_bounds = array<i64: 2, 64, 32>}, {pipeline_mode = #tpu.pipeline_mode<synchronous>, transform_indices = @transform_10, window_bounds = array<i64: 2, 1, 32>}, {pipeline_mode = #tpu.pipeline_mode<synchronous>, transform_indices = @transform_11, window_bounds = array<i64: 2, 1, 32>}, {pipeline_mode = #tpu.pipeline_mode<synchronous>, transform_indices = @transform_12, window_bounds = array<i64: 2, 1, 32>}, {pipeline_mode = #tpu.pipeline_mode<synchronous>, transform_indices = @transform_13, window_bounds = array<i64: 2, 1, 32>}, {pipeline_mode = #tpu.pipeline_mode<synchronous>, transform_indices = @transform_14, window_bounds = array<i64: 2, 1, 32>}, {pipeline_mode = #tpu.pipeline_mode<synchronous>, transform_indices = @transform_15, window_bounds = array<i64: 64, 32>}, {pipeline_mode = #tpu.pipeline_mode<synchronous>, transform_indices = @transform_16, window_bounds = array<i64: 64, 16>}, {pipeline_mode = #tpu.pipeline_mode<synchronous>, transform_indices = @transform_17, window_bounds = array<i64: 16, 32>}]} {
    %c0 = arith.constant 0 : index
    %c0_0 = arith.constant 0 : index
    %0 = vector.load %arg1[%c0, %c0_0] : memref<16x16xf32, #tpu.memory_space<vmem>>, vector<16x16xf32>
    %c0_1 = arith.constant 0 : index
    %c0_2 = arith.constant 0 : index
    %1 = vector.load %arg2[%c0_1, %c0_2] : memref<16x32xf32, #tpu.memory_space<vmem>>, vector<16x32xf32>
    %cst = arith.constant dense<0.000000e+00> : vector<16x32xf32>
    %2 = tpu.matmul %0, %1, %cst {dimension_numbers = #tpu.dot_dimension_numbers<[1], [0], [0], [1], [0, 0, 1, 1], [], []>} : vector<16x16xf32>, vector<16x32xf32>, vector<16x32xf32> -> vector<16x32xf32>
    %c0_3 = arith.constant 0 : index
    %c0_4 = arith.constant 0 : index
    %3 = vector.load %arg3[%c0_3, %c0_4] : memref<1x32xf32, #tpu.memory_space<vmem>>, vector<1x32xf32>
    %4 = vector.broadcast %3 : vector<1x32xf32> to vector<16x32xf32>
    %5 = arith.addf %2, %4 : vector<16x32xf32>
    %c0_5 = arith.constant 0 : index
    %c0_6 = arith.constant 0 : index
    %6 = vector.load %arg16[%c0_5, %c0_6] : memref<64x32xf32, #tpu.memory_space<vmem>>, vector<64x32xf32>
    %c0_7 = arith.constant 0 : index
    %c0_8 = arith.constant 0 : index
    %7 = vector.load %arg17[%c0_7, %c0_8] : memref<64x16xf32, #tpu.memory_space<vmem>>, vector<64x16xf32>
    %c0_9 = arith.constant 0 : index
    %c0_10 = arith.constant 0 : index
    %c0_11 = arith.constant 0 : index
    %8 = vector.load %arg4[%c0_9, %c0_10, %c0_11] : memref<2x32x96xf32, #tpu.memory_space<vmem>>, vector<1x32x96xf32>
    %9 = vector.shape_cast %8 : vector<1x32x96xf32> to vector<32x96xf32>
    %cst_12 = arith.constant dense<0.000000e+00> : vector<16x96xf32>
    %10 = tpu.matmul %5, %9, %cst_12 {dimension_numbers = #tpu.dot_dimension_numbers<[1], [0], [0], [1], [0, 0, 1, 1], [], []>} : vector<16x32xf32>, vector<32x96xf32>, vector<16x96xf32> -> vector<16x96xf32>
    %c0_13 = arith.constant 0 : index
    %c0_14 = arith.constant 0 : index
    %c0_15 = arith.constant 0 : index
    %11 = vector.load %arg5[%c0_13, %c0_14, %c0_15] : memref<2x1x96xf32, #tpu.memory_space<vmem>>, vector<1x1x96xf32>
    %12 = vector.shape_cast %11 : vector<1x1x96xf32> to vector<1x96xf32>
    %13 = vector.broadcast %12 : vector<1x96xf32> to vector<16x96xf32>
    %14 = arith.addf %10, %13 : vector<16x96xf32>
    %15 = vector.extract_strided_slice %14 {offsets = [0, 0], sizes = [16, 32], strides = [1, 1]} : vector<16x96xf32> to vector<16x32xf32>
    %16 = vector.extract_strided_slice %14 {offsets = [0, 32], sizes = [16, 32], strides = [1, 1]} : vector<16x96xf32> to vector<16x32xf32>
    %17 = vector.extract_strided_slice %14 {offsets = [0, 64], sizes = [16, 32], strides = [1, 1]} : vector<16x96xf32> to vector<16x32xf32>
    %18 = tpu.concatenate %15, %15, %15, %15 in 0 : vector<16x32xf32>, vector<16x32xf32>, vector<16x32xf32>, vector<16x32xf32> -> vector<64x32xf32>
    %19 = arith.mulf %18, %6 : vector<64x32xf32>
    %20 = tpu.transpose %16, [1, 0] : vector<16x32xf32> -> vector<32x16xf32>
    %cst_16 = arith.constant dense<0.000000e+00> : vector<64x16xf32>
    %21 = tpu.matmul %19, %20, %cst_16 {dimension_numbers = #tpu.dot_dimension_numbers<[1], [0], [0], [1], [0, 0, 1, 1], [], []>} : vector<64x32xf32>, vector<32x16xf32>, vector<64x16xf32> -> vector<64x16xf32>
    %22 = arith.addf %21, %7 : vector<64x16xf32>
    %cst_17 = arith.constant dense<0xFF800000> : vector<64xf32>
    %23 = vector.multi_reduction <maximumf>, %22, %cst_17 [1] : vector<64x16xf32> to vector<64xf32>
    %24 = vector.shape_cast %23 : vector<64xf32> to vector<64x1xf32>
    %25 = vector.broadcast %24 : vector<64x1xf32> to vector<64x16xf32>
    %26 = arith.subf %22, %25 : vector<64x16xf32>
    %27 = math.exp %26 : vector<64x16xf32>
    %cst_18 = arith.constant dense<0.000000e+00> : vector<64xf32>
    %28 = vector.multi_reduction <add>, %27, %cst_18 [1] : vector<64x16xf32> to vector<64xf32>
    %29 = vector.shape_cast %28 : vector<64xf32> to vector<64x1xf32>
    %30 = tpu.reciprocal %29 {approx = true} : vector<64x1xf32> -> vector<64x1xf32>
    %31 = vector.broadcast %30 : vector<64x1xf32> to vector<64x16xf32>
    %32 = arith.mulf %27, %31 : vector<64x16xf32>
    %cst_19 = arith.constant dense<0.000000e+00> : vector<64x32xf32>
    %33 = tpu.matmul %32, %17, %cst_19 {dimension_numbers = #tpu.dot_dimension_numbers<[1], [0], [0], [1], [0, 0, 1, 1], [], []>} : vector<64x16xf32>, vector<16x32xf32>, vector<64x32xf32> -> vector<64x32xf32>
    %34 = arith.mulf %33, %6 : vector<64x32xf32>
    %35 = vector.extract_strided_slice %34 {offsets = [0, 0], sizes = [16, 32], strides = [1, 1]} : vector<64x32xf32> to vector<16x32xf32>
    %36 = vector.extract_strided_slice %34 {offsets = [16, 0], sizes = [16, 32], strides = [1, 1]} : vector<64x32xf32> to vector<16x32xf32>
    %37 = arith.addf %35, %36 : vector<16x32xf32>
    %38 = vector.extract_strided_slice %34 {offsets = [32, 0], sizes = [16, 32], strides = [1, 1]} : vector<64x32xf32> to vector<16x32xf32>
    %39 = arith.addf %37, %38 : vector<16x32xf32>
    %40 = vector.extract_strided_slice %34 {offsets = [48, 0], sizes = [16, 32], strides = [1, 1]} : vector<64x32xf32> to vector<16x32xf32>
    %41 = arith.addf %39, %40 : vector<16x32xf32>
    %c0_20 = arith.constant 0 : index
    %c0_21 = arith.constant 0 : index
    %c0_22 = arith.constant 0 : index
    %42 = vector.load %arg6[%c0_20, %c0_21, %c0_22] : memref<2x32x32xf32, #tpu.memory_space<vmem>>, vector<1x32x32xf32>
    %43 = vector.shape_cast %42 : vector<1x32x32xf32> to vector<32x32xf32>
    %cst_23 = arith.constant dense<0.000000e+00> : vector<16x32xf32>
    %44 = tpu.matmul %41, %43, %cst_23 {dimension_numbers = #tpu.dot_dimension_numbers<[1], [0], [0], [1], [0, 0, 1, 1], [], []>} : vector<16x32xf32>, vector<32x32xf32>, vector<16x32xf32> -> vector<16x32xf32>
    %c0_24 = arith.constant 0 : index
    %c0_25 = arith.constant 0 : index
    %c0_26 = arith.constant 0 : index
    %45 = vector.load %arg7[%c0_24, %c0_25, %c0_26] : memref<2x1x32xf32, #tpu.memory_space<vmem>>, vector<1x1x32xf32>
    %46 = vector.shape_cast %45 : vector<1x1x32xf32> to vector<1x32xf32>
    %47 = vector.broadcast %46 : vector<1x32xf32> to vector<16x32xf32>
    %48 = arith.addf %44, %47 : vector<16x32xf32>
    %49 = arith.addf %5, %48 : vector<16x32xf32>
    %c0_27 = arith.constant 0 : index
    %c0_28 = arith.constant 0 : index
    %c0_29 = arith.constant 0 : index
    %50 = vector.load %arg12[%c0_27, %c0_28, %c0_29] : memref<2x1x32xf32, #tpu.memory_space<vmem>>, vector<1x1x32xf32>
    %51 = vector.shape_cast %50 : vector<1x1x32xf32> to vector<1x32xf32>
    %c0_30 = arith.constant 0 : index
    %c0_31 = arith.constant 0 : index
    %c0_32 = arith.constant 0 : index
    %52 = vector.load %arg13[%c0_30, %c0_31, %c0_32] : memref<2x1x32xf32, #tpu.memory_space<vmem>>, vector<1x1x32xf32>
    %53 = vector.shape_cast %52 : vector<1x1x32xf32> to vector<1x32xf32>
    %cst_33 = arith.constant dense<0.000000e+00> : vector<16xf32>
    %54 = vector.multi_reduction <add>, %49, %cst_33 [1] : vector<16x32xf32> to vector<16xf32>
    %55 = vector.shape_cast %54 : vector<16xf32> to vector<16x1xf32>
    %cst_34 = arith.constant 3.200000e+01 : f32
    %56 = vector.broadcast %cst_34 : f32 to vector<16x1xf32>
    %57 = arith.divf %55, %56 : vector<16x1xf32>
    %58 = arith.mulf %49, %49 : vector<16x32xf32>
    %cst_35 = arith.constant dense<0.000000e+00> : vector<16xf32>
    %59 = vector.multi_reduction <add>, %58, %cst_35 [1] : vector<16x32xf32> to vector<16xf32>
    %60 = vector.shape_cast %59 : vector<16xf32> to vector<16x1xf32>
    %cst_36 = arith.constant 3.200000e+01 : f32
    %61 = vector.broadcast %cst_36 : f32 to vector<16x1xf32>
    %62 = arith.divf %60, %61 : vector<16x1xf32>
    %63 = arith.mulf %57, %57 : vector<16x1xf32>
    %64 = arith.subf %62, %63 : vector<16x1xf32>
    %65 = vector.broadcast %57 : vector<16x1xf32> to vector<16x32xf32>
    %66 = arith.subf %49, %65 : vector<16x32xf32>
    %cst_37 = arith.constant 9.99999974E-6 : f32
    %67 = vector.broadcast %cst_37 : f32 to vector<16x1xf32>
    %68 = arith.addf %64, %67 : vector<16x1xf32>
    %69 = math.rsqrt %68 : vector<16x1xf32>
    %70 = vector.broadcast %69 : vector<16x1xf32> to vector<16x32xf32>
    %71 = arith.mulf %66, %70 : vector<16x32xf32>
    %72 = vector.broadcast %51 : vector<1x32xf32> to vector<16x32xf32>
    %73 = arith.mulf %71, %72 : vector<16x32xf32>
    %74 = vector.broadcast %53 : vector<1x32xf32> to vector<16x32xf32>
    %75 = arith.addf %73, %74 : vector<16x32xf32>
    %c0_38 = arith.constant 0 : index
    %c0_39 = arith.constant 0 : index
    %c0_40 = arith.constant 0 : index
    %76 = vector.load %arg8[%c0_38, %c0_39, %c0_40] : memref<2x32x64xf32, #tpu.memory_space<vmem>>, vector<1x32x64xf32>
    %77 = vector.shape_cast %76 : vector<1x32x64xf32> to vector<32x64xf32>
    %cst_41 = arith.constant dense<0.000000e+00> : vector<16x64xf32>
    %78 = tpu.matmul %75, %77, %cst_41 {dimension_numbers = #tpu.dot_dimension_numbers<[1], [0], [0], [1], [0, 0, 1, 1], [], []>} : vector<16x32xf32>, vector<32x64xf32>, vector<16x64xf32> -> vector<16x64xf32>
    %c0_42 = arith.constant 0 : index
    %c0_43 = arith.constant 0 : index
    %c0_44 = arith.constant 0 : index
    %79 = vector.load %arg9[%c0_42, %c0_43, %c0_44] : memref<2x1x64xf32, #tpu.memory_space<vmem>>, vector<1x1x64xf32>
    %80 = vector.shape_cast %79 : vector<1x1x64xf32> to vector<1x64xf32>
    %81 = vector.broadcast %80 : vector<1x64xf32> to vector<16x64xf32>
    %82 = arith.addf %78, %81 : vector<16x64xf32>
    %cst_45 = arith.constant 0.000000e+00 : f32
    %83 = vector.broadcast %cst_45 : f32 to vector<16x64xf32>
    %84 = arith.maximumf %82, %83 : vector<16x64xf32>
    %c0_46 = arith.constant 0 : index
    %c0_47 = arith.constant 0 : index
    %c0_48 = arith.constant 0 : index
    %85 = vector.load %arg10[%c0_46, %c0_47, %c0_48] : memref<2x64x32xf32, #tpu.memory_space<vmem>>, vector<1x64x32xf32>
    %86 = vector.shape_cast %85 : vector<1x64x32xf32> to vector<64x32xf32>
    %cst_49 = arith.constant dense<0.000000e+00> : vector<16x32xf32>
    %87 = tpu.matmul %84, %86, %cst_49 {dimension_numbers = #tpu.dot_dimension_numbers<[1], [0], [0], [1], [0, 0, 1, 1], [], []>} : vector<16x64xf32>, vector<64x32xf32>, vector<16x32xf32> -> vector<16x32xf32>
    %c0_50 = arith.constant 0 : index
    %c0_51 = arith.constant 0 : index
    %c0_52 = arith.constant 0 : index
    %88 = vector.load %arg11[%c0_50, %c0_51, %c0_52] : memref<2x1x32xf32, #tpu.memory_space<vmem>>, vector<1x1x32xf32>
    %89 = vector.shape_cast %88 : vector<1x1x32xf32> to vector<1x32xf32>
    %90 = vector.broadcast %89 : vector<1x32xf32> to vector<16x32xf32>
    %91 = arith.addf %87, %90 : vector<16x32xf32>
    %92 = arith.addf %75, %91 : vector<16x32xf32>
    %c0_53 = arith.constant 0 : index
    %c0_54 = arith.constant 0 : index
    %c0_55 = arith.constant 0 : index
    %93 = vector.load %arg14[%c0_53, %c0_54, %c0_55] : memref<2x1x32xf32, #tpu.memory_space<vmem>>, vector<1x1x32xf32>
    %94 = vector.shape_cast %93 : vector<1x1x32xf32> to vector<1x32xf32>
    %c0_56 = arith.constant 0 : index
    %c0_57 = arith.constant 0 : index
    %c0_58 = arith.constant 0 : index
    %95 = vector.load %arg15[%c0_56, %c0_57, %c0_58] : memref<2x1x32xf32, #tpu.memory_space<vmem>>, vector<1x1x32xf32>
    %96 = vector.shape_cast %95 : vector<1x1x32xf32> to vector<1x32xf32>
    %cst_59 = arith.constant dense<0.000000e+00> : vector<16xf32>
    %97 = vector.multi_reduction <add>, %92, %cst_59 [1] : vector<16x32xf32> to vector<16xf32>
    %98 = vector.shape_cast %97 : vector<16xf32> to vector<16x1xf32>
    %cst_60 = arith.constant 3.200000e+01 : f32
    %99 = vector.broadcast %cst_60 : f32 to vector<16x1xf32>
    %100 = arith.divf %98, %99 : vector<16x1xf32>
    %101 = arith.mulf %92, %92 : vector<16x32xf32>
    %cst_61 = arith.constant dense<0.000000e+00> : vector<16xf32>
    %102 = vector.multi_reduction <add>, %101, %cst_61 [1] : vector<16x32xf32> to vector<16xf32>
    %103 = vector.shape_cast %102 : vector<16xf32> to vector<16x1xf32>
    %cst_62 = arith.constant 3.200000e+01 : f32
    %104 = vector.broadcast %cst_62 : f32 to vector<16x1xf32>
    %105 = arith.divf %103, %104 : vector<16x1xf32>
    %106 = arith.mulf %100, %100 : vector<16x1xf32>
    %107 = arith.subf %105, %106 : vector<16x1xf32>
    %108 = vector.broadcast %100 : vector<16x1xf32> to vector<16x32xf32>
    %109 = arith.subf %92, %108 : vector<16x32xf32>
    %cst_63 = arith.constant 9.99999974E-6 : f32
    %110 = vector.broadcast %cst_63 : f32 to vector<16x1xf32>
    %111 = arith.addf %107, %110 : vector<16x1xf32>
    %112 = math.rsqrt %111 : vector<16x1xf32>
    %113 = vector.broadcast %112 : vector<16x1xf32> to vector<16x32xf32>
    %114 = arith.mulf %109, %113 : vector<16x32xf32>
    %115 = vector.broadcast %94 : vector<1x32xf32> to vector<16x32xf32>
    %116 = arith.mulf %114, %115 : vector<16x32xf32>
    %117 = vector.broadcast %96 : vector<1x32xf32> to vector<16x32xf32>
    %118 = arith.addf %116, %117 : vector<16x32xf32>
    %c1 = arith.constant 1 : index
    %c0_64 = arith.constant 0 : index
    %c0_65 = arith.constant 0 : index
    %119 = vector.load %arg4[%c1, %c0_64, %c0_65] : memref<2x32x96xf32, #tpu.memory_space<vmem>>, vector<1x32x96xf32>
    %120 = vector.shape_cast %119 : vector<1x32x96xf32> to vector<32x96xf32>
    %cst_66 = arith.constant dense<0.000000e+00> : vector<16x96xf32>
    %121 = tpu.matmul %118, %120, %cst_66 {dimension_numbers = #tpu.dot_dimension_numbers<[1], [0], [0], [1], [0, 0, 1, 1], [], []>} : vector<16x32xf32>, vector<32x96xf32>, vector<16x96xf32> -> vector<16x96xf32>
    %c1_67 = arith.constant 1 : index
    %c0_68 = arith.constant 0 : index
    %c0_69 = arith.constant 0 : index
    %122 = vector.load %arg5[%c1_67, %c0_68, %c0_69] : memref<2x1x96xf32, #tpu.memory_space<vmem>>, vector<1x1x96xf32>
    %123 = vector.shape_cast %122 : vector<1x1x96xf32> to vector<1x96xf32>
    %124 = vector.broadcast %123 : vector<1x96xf32> to vector<16x96xf32>
    %125 = arith.addf %121, %124 : vector<16x96xf32>
    %126 = vector.extract_strided_slice %125 {offsets = [0, 0], sizes = [16, 32], strides = [1, 1]} : vector<16x96xf32> to vector<16x32xf32>
    %127 = vector.extract_strided_slice %125 {offsets = [0, 32], sizes = [16, 32], strides = [1, 1]} : vector<16x96xf32> to vector<16x32xf32>
    %128 = vector.extract_strided_slice %125 {offsets = [0, 64], sizes = [16, 32], strides = [1, 1]} : vector<16x96xf32> to vector<16x32xf32>
    %129 = tpu.concatenate %126, %126, %126, %126 in 0 : vector<16x32xf32>, vector<16x32xf32>, vector<16x32xf32>, vector<16x32xf32> -> vector<64x32xf32>
    %130 = arith.mulf %129, %6 : vector<64x32xf32>
    %131 = tpu.transpose %127, [1, 0] : vector<16x32xf32> -> vector<32x16xf32>
    %cst_70 = arith.constant dense<0.000000e+00> : vector<64x16xf32>
    %132 = tpu.matmul %130, %131, %cst_70 {dimension_numbers = #tpu.dot_dimension_numbers<[1], [0], [0], [1], [0, 0, 1, 1], [], []>} : vector<64x32xf32>, vector<32x16xf32>, vector<64x16xf32> -> vector<64x16xf32>
    %133 = arith.addf %132, %7 : vector<64x16xf32>
    %cst_71 = arith.constant dense<0xFF800000> : vector<64xf32>
    %134 = vector.multi_reduction <maximumf>, %133, %cst_71 [1] : vector<64x16xf32> to vector<64xf32>
    %135 = vector.shape_cast %134 : vector<64xf32> to vector<64x1xf32>
    %136 = vector.broadcast %135 : vector<64x1xf32> to vector<64x16xf32>
    %137 = arith.subf %133, %136 : vector<64x16xf32>
    %138 = math.exp %137 : vector<64x16xf32>
    %cst_72 = arith.constant dense<0.000000e+00> : vector<64xf32>
    %139 = vector.multi_reduction <add>, %138, %cst_72 [1] : vector<64x16xf32> to vector<64xf32>
    %140 = vector.shape_cast %139 : vector<64xf32> to vector<64x1xf32>
    %141 = tpu.reciprocal %140 {approx = true} : vector<64x1xf32> -> vector<64x1xf32>
    %142 = vector.broadcast %141 : vector<64x1xf32> to vector<64x16xf32>
    %143 = arith.mulf %138, %142 : vector<64x16xf32>
    %cst_73 = arith.constant dense<0.000000e+00> : vector<64x32xf32>
    %144 = tpu.matmul %143, %128, %cst_73 {dimension_numbers = #tpu.dot_dimension_numbers<[1], [0], [0], [1], [0, 0, 1, 1], [], []>} : vector<64x16xf32>, vector<16x32xf32>, vector<64x32xf32> -> vector<64x32xf32>
    %145 = arith.mulf %144, %6 : vector<64x32xf32>
    %146 = vector.extract_strided_slice %145 {offsets = [0, 0], sizes = [16, 32], strides = [1, 1]} : vector<64x32xf32> to vector<16x32xf32>
    %147 = vector.extract_strided_slice %145 {offsets = [16, 0], sizes = [16, 32], strides = [1, 1]} : vector<64x32xf32> to vector<16x32xf32>
    %148 = arith.addf %146, %147 : vector<16x32xf32>
    %149 = vector.extract_strided_slice %145 {offsets = [32, 0], sizes = [16, 32], strides = [1, 1]} : vector<64x32xf32> to vector<16x32xf32>
    %150 = arith.addf %148, %149 : vector<16x32xf32>
    %151 = vector.extract_strided_slice %145 {offsets = [48, 0], sizes = [16, 32], strides = [1, 1]} : vector<64x32xf32> to vector<16x32xf32>
    %152 = arith.addf %150, %151 : vector<16x32xf32>
    %c1_74 = arith.constant 1 : index
    %c0_75 = arith.constant 0 : index
    %c0_76 = arith.constant 0 : index
    %153 = vector.load %arg6[%c1_74, %c0_75, %c0_76] : memref<2x32x32xf32, #tpu.memory_space<vmem>>, vector<1x32x32xf32>
    %154 = vector.shape_cast %153 : vector<1x32x32xf32> to vector<32x32xf32>
    %cst_77 = arith.constant dense<0.000000e+00> : vector<16x32xf32>
    %155 = tpu.matmul %152, %154, %cst_77 {dimension_numbers = #tpu.dot_dimension_numbers<[1], [0], [0], [1], [0, 0, 1, 1], [], []>} : vector<16x32xf32>, vector<32x32xf32>, vector<16x32xf32> -> vector<16x32xf32>
    %c1_78 = arith.constant 1 : index
    %c0_79 = arith.constant 0 : index
    %c0_80 = arith.constant 0 : index
    %156 = vector.load %arg7[%c1_78, %c0_79, %c0_80] : memref<2x1x32xf32, #tpu.memory_space<vmem>>, vector<1x1x32xf32>
    %157 = vector.shape_cast %156 : vector<1x1x32xf32> to vector<1x32xf32>
    %158 = vector.broadcast %157 : vector<1x32xf32> to vector<16x32xf32>
    %159 = arith.addf %155, %158 : vector<16x32xf32>
    %160 = arith.addf %118, %159 : vector<16x32xf32>
    %c1_81 = arith.constant 1 : index
    %c0_82 = arith.constant 0 : index
    %c0_83 = arith.constant 0 : index
    %161 = vector.load %arg12[%c1_81, %c0_82, %c0_83] : memref<2x1x32xf32, #tpu.memory_space<vmem>>, vector<1x1x32xf32>
    %162 = vector.shape_cast %161 : vector<1x1x32xf32> to vector<1x32xf32>
    %c1_84 = arith.constant 1 : index
    %c0_85 = arith.constant 0 : index
    %c0_86 = arith.constant 0 : index
    %163 = vector.load %arg13[%c1_84, %c0_85, %c0_86] : memref<2x1x32xf32, #tpu.memory_space<vmem>>, vector<1x1x32xf32>
    %164 = vector.shape_cast %163 : vector<1x1x32xf32> to vector<1x32xf32>
    %cst_87 = arith.constant dense<0.000000e+00> : vector<16xf32>
    %165 = vector.multi_reduction <add>, %160, %cst_87 [1] : vector<16x32xf32> to vector<16xf32>
    %166 = vector.shape_cast %165 : vector<16xf32> to vector<16x1xf32>
    %cst_88 = arith.constant 3.200000e+01 : f32
    %167 = vector.broadcast %cst_88 : f32 to vector<16x1xf32>
    %168 = arith.divf %166, %167 : vector<16x1xf32>
    %169 = arith.mulf %160, %160 : vector<16x32xf32>
    %cst_89 = arith.constant dense<0.000000e+00> : vector<16xf32>
    %170 = vector.multi_reduction <add>, %169, %cst_89 [1] : vector<16x32xf32> to vector<16xf32>
    %171 = vector.shape_cast %170 : vector<16xf32> to vector<16x1xf32>
    %cst_90 = arith.constant 3.200000e+01 : f32
    %172 = vector.broadcast %cst_90 : f32 to vector<16x1xf32>
    %173 = arith.divf %171, %172 : vector<16x1xf32>
    %174 = arith.mulf %168, %168 : vector<16x1xf32>
    %175 = arith.subf %173, %174 : vector<16x1xf32>
    %176 = vector.broadcast %168 : vector<16x1xf32> to vector<16x32xf32>
    %177 = arith.subf %160, %176 : vector<16x32xf32>
    %cst_91 = arith.constant 9.99999974E-6 : f32
    %178 = vector.broadcast %cst_91 : f32 to vector<16x1xf32>
    %179 = arith.addf %175, %178 : vector<16x1xf32>
    %180 = math.rsqrt %179 : vector<16x1xf32>
    %181 = vector.broadcast %180 : vector<16x1xf32> to vector<16x32xf32>
    %182 = arith.mulf %177, %181 : vector<16x32xf32>
    %183 = vector.broadcast %162 : vector<1x32xf32> to vector<16x32xf32>
    %184 = arith.mulf %182, %183 : vector<16x32xf32>
    %185 = vector.broadcast %164 : vector<1x32xf32> to vector<16x32xf32>
    %186 = arith.addf %184, %185 : vector<16x32xf32>
    %c1_92 = arith.constant 1 : index
    %c0_93 = arith.constant 0 : index
    %c0_94 = arith.constant 0 : index
    %187 = vector.load %arg8[%c1_92, %c0_93, %c0_94] : memref<2x32x64xf32, #tpu.memory_space<vmem>>, vector<1x32x64xf32>
    %188 = vector.shape_cast %187 : vector<1x32x64xf32> to vector<32x64xf32>
    %cst_95 = arith.constant dense<0.000000e+00> : vector<16x64xf32>
    %189 = tpu.matmul %186, %188, %cst_95 {dimension_numbers = #tpu.dot_dimension_numbers<[1], [0], [0], [1], [0, 0, 1, 1], [], []>} : vector<16x32xf32>, vector<32x64xf32>, vector<16x64xf32> -> vector<16x64xf32>
    %c1_96 = arith.constant 1 : index
    %c0_97 = arith.constant 0 : index
    %c0_98 = arith.constant 0 : index
    %190 = vector.load %arg9[%c1_96, %c0_97, %c0_98] : memref<2x1x64xf32, #tpu.memory_space<vmem>>, vector<1x1x64xf32>
    %191 = vector.shape_cast %190 : vector<1x1x64xf32> to vector<1x64xf32>
    %192 = vector.broadcast %191 : vector<1x64xf32> to vector<16x64xf32>
    %193 = arith.addf %189, %192 : vector<16x64xf32>
    %cst_99 = arith.constant 0.000000e+00 : f32
    %194 = vector.broadcast %cst_99 : f32 to vector<16x64xf32>
    %195 = arith.maximumf %193, %194 : vector<16x64xf32>
    %c1_100 = arith.constant 1 : index
    %c0_101 = arith.constant 0 : index
    %c0_102 = arith.constant 0 : index
    %196 = vector.load %arg10[%c1_100, %c0_101, %c0_102] : memref<2x64x32xf32, #tpu.memory_space<vmem>>, vector<1x64x32xf32>
    %197 = vector.shape_cast %196 : vector<1x64x32xf32> to vector<64x32xf32>
    %cst_103 = arith.constant dense<0.000000e+00> : vector<16x32xf32>
    %198 = tpu.matmul %195, %197, %cst_103 {dimension_numbers = #tpu.dot_dimension_numbers<[1], [0], [0], [1], [0, 0, 1, 1], [], []>} : vector<16x64xf32>, vector<64x32xf32>, vector<16x32xf32> -> vector<16x32xf32>
    %c1_104 = arith.constant 1 : index
    %c0_105 = arith.constant 0 : index
    %c0_106 = arith.constant 0 : index
    %199 = vector.load %arg11[%c1_104, %c0_105, %c0_106] : memref<2x1x32xf32, #tpu.memory_space<vmem>>, vector<1x1x32xf32>
    %200 = vector.shape_cast %199 : vector<1x1x32xf32> to vector<1x32xf32>
    %201 = vector.broadcast %200 : vector<1x32xf32> to vector<16x32xf32>
    %202 = arith.addf %198, %201 : vector<16x32xf32>
    %203 = arith.addf %186, %202 : vector<16x32xf32>
    %c1_107 = arith.constant 1 : index
    %c0_108 = arith.constant 0 : index
    %c0_109 = arith.constant 0 : index
    %204 = vector.load %arg14[%c1_107, %c0_108, %c0_109] : memref<2x1x32xf32, #tpu.memory_space<vmem>>, vector<1x1x32xf32>
    %205 = vector.shape_cast %204 : vector<1x1x32xf32> to vector<1x32xf32>
    %c1_110 = arith.constant 1 : index
    %c0_111 = arith.constant 0 : index
    %c0_112 = arith.constant 0 : index
    %206 = vector.load %arg15[%c1_110, %c0_111, %c0_112] : memref<2x1x32xf32, #tpu.memory_space<vmem>>, vector<1x1x32xf32>
    %207 = vector.shape_cast %206 : vector<1x1x32xf32> to vector<1x32xf32>
    %cst_113 = arith.constant dense<0.000000e+00> : vector<16xf32>
    %208 = vector.multi_reduction <add>, %203, %cst_113 [1] : vector<16x32xf32> to vector<16xf32>
    %209 = vector.shape_cast %208 : vector<16xf32> to vector<16x1xf32>
    %cst_114 = arith.constant 3.200000e+01 : f32
    %210 = vector.broadcast %cst_114 : f32 to vector<16x1xf32>
    %211 = arith.divf %209, %210 : vector<16x1xf32>
    %212 = arith.mulf %203, %203 : vector<16x32xf32>
    %cst_115 = arith.constant dense<0.000000e+00> : vector<16xf32>
    %213 = vector.multi_reduction <add>, %212, %cst_115 [1] : vector<16x32xf32> to vector<16xf32>
    %214 = vector.shape_cast %213 : vector<16xf32> to vector<16x1xf32>
    %cst_116 = arith.constant 3.200000e+01 : f32
    %215 = vector.broadcast %cst_116 : f32 to vector<16x1xf32>
    %216 = arith.divf %214, %215 : vector<16x1xf32>
    %217 = arith.mulf %211, %211 : vector<16x1xf32>
    %218 = arith.subf %216, %217 : vector<16x1xf32>
    %219 = vector.broadcast %211 : vector<16x1xf32> to vector<16x32xf32>
    %220 = arith.subf %203, %219 : vector<16x32xf32>
    %cst_117 = arith.constant 9.99999974E-6 : f32
    %221 = vector.broadcast %cst_117 : f32 to vector<16x1xf32>
    %222 = arith.addf %218, %221 : vector<16x1xf32>
    %223 = math.rsqrt %222 : vector<16x1xf32>
    %224 = vector.broadcast %223 : vector<16x1xf32> to vector<16x32xf32>
    %225 = arith.mulf %220, %224 : vector<16x32xf32>
    %226 = vector.broadcast %205 : vector<1x32xf32> to vector<16x32xf32>
    %227 = arith.mulf %225, %226 : vector<16x32xf32>
    %228 = vector.broadcast %207 : vector<1x32xf32> to vector<16x32xf32>
    %229 = arith.addf %227, %228 : vector<16x32xf32>
    %c0_118 = arith.constant 0 : index
    %c0_119 = arith.constant 0 : index
    %230 = vector.load %arg18[%c0_118, %c0_119] : memref<16x32xf32, #tpu.memory_space<vmem>>, vector<16x32xf32>
    tpu.vector_store %arg18[%c0_118, %c0_119], %229 {strides = array<i32>} : memref<16x32xf32, #tpu.memory_space<vmem>>, vector<16x32xf32>,
    return
  }
  func.func @transform_0(%arg0: i32) -> (i32, i32) {
    %c0_i32 = arith.constant 0 : i32
    %c0_i32_0 = arith.constant 0 : i32
    %c0_i32_1 = arith.constant 0 : i32
    return %c0_i32, %c0_i32_0 : i32, i32
  }
  func.func @transform_1(%arg0: i32) -> (i32, i32) {
    %c0_i32 = arith.constant 0 : i32
    %c0_i32_0 = arith.constant 0 : i32
    %c0_i32_1 = arith.constant 0 : i32
    return %c0_i32, %c0_i32_0 : i32, i32
  }
  func.func @transform_2(%arg0: i32) -> (i32, i32) {
    %c0_i32 = arith.constant 0 : i32
    %c0_i32_0 = arith.constant 0 : i32
    %c0_i32_1 = arith.constant 0 : i32
    return %c0_i32, %c0_i32_0 : i32, i32
  }
  func.func @transform_3(%arg0: i32) -> (i32, i32, i32) {
    %c0_i32 = arith.constant 0 : i32
    %c0_i32_0 = arith.constant 0 : i32
    %c0_i32_1 = arith.constant 0 : i32
    %c0_i32_2 = arith.constant 0 : i32
    return %c0_i32, %c0_i32_0, %c0_i32_1 : i32, i32, i32
  }
  func.func @transform_4(%arg0: i32) -> (i32, i32, i32) {
    %c0_i32 = arith.constant 0 : i32
    %c0_i32_0 = arith.constant 0 : i32
    %c0_i32_1 = arith.constant 0 : i32
    %c0_i32_2 = arith.constant 0 : i32
    return %c0_i32, %c0_i32_0, %c0_i32_1 : i32, i32, i32
  }
  func.func @transform_5(%arg0: i32) -> (i32, i32, i32) {
    %c0_i32 = arith.constant 0 : i32
    %c0_i32_0 = arith.constant 0 : i32
    %c0_i32_1 = arith.constant 0 : i32
    %c0_i32_2 = arith.constant 0 : i32
    return %c0_i32, %c0_i32_0, %c0_i32_1 : i32, i32, i32
  }
  func.func @transform_6(%arg0: i32) -> (i32, i32, i32) {
    %c0_i32 = arith.constant 0 : i32
    %c0_i32_0 = arith.constant 0 : i32
    %c0_i32_1 = arith.constant 0 : i32
    %c0_i32_2 = arith.constant 0 : i32
    return %c0_i32, %c0_i32_0, %c0_i32_1 : i32, i32, i32
  }
  func.func @transform_7(%arg0: i32) -> (i32, i32, i32) {
    %c0_i32 = arith.constant 0 : i32
    %c0_i32_0 = arith.constant 0 : i32
    %c0_i32_1 = arith.constant 0 : i32
    %c0_i32_2 = arith.constant 0 : i32
    return %c0_i32, %c0_i32_0, %c0_i32_1 : i32, i32, i32
  }
  func.func @transform_8(%arg0: i32) -> (i32, i32, i32) {
    %c0_i32 = arith.constant 0 : i32
    %c0_i32_0 = arith.constant 0 : i32
    %c0_i32_1 = arith.constant 0 : i32
    %c0_i32_2 = arith.constant 0 : i32
    return %c0_i32, %c0_i32_0, %c0_i32_1 : i32, i32, i32
  }
  func.func @transform_9(%arg0: i32) -> (i32, i32, i32) {
    %c0_i32 = arith.constant 0 : i32
    %c0_i32_0 = arith.constant 0 : i32
    %c0_i32_1 = arith.constant 0 : i32
    %c0_i32_2 = arith.constant 0 : i32
    return %c0_i32, %c0_i32_0, %c0_i32_1 : i32, i32, i32
  }
  func.func @transform_10(%arg0: i32) -> (i32, i32, i32) {
    %c0_i32 = arith.constant 0 : i32
    %c0_i32_0 = arith.constant 0 : i32
    %c0_i32_1 = arith.constant 0 : i32
    %c0_i32_2 = arith.constant 0 : i32
    return %c0_i32, %c0_i32_0, %c0_i32_1 : i32, i32, i32
  }
  func.func @transform_11(%arg0: i32) -> (i32, i32, i32) {
    %c0_i32 = arith.constant 0 : i32
    %c0_i32_0 = arith.constant 0 : i32
    %c0_i32_1 = arith.constant 0 : i32
    %c0_i32_2 = arith.constant 0 : i32
    return %c0_i32, %c0_i32_0, %c0_i32_1 : i32, i32, i32
  }
  func.func @transform_12(%arg0: i32) -> (i32, i32, i32) {
    %c0_i32 = arith.constant 0 : i32
    %c0_i32_0 = arith.constant 0 : i32
    %c0_i32_1 = arith.constant 0 : i32
    %c0_i32_2 = arith.constant 0 : i32
    return %c0_i32, %c0_i32_0, %c0_i32_1 : i32, i32, i32
  }
  func.func @transform_13(%arg0: i32) -> (i32, i32, i32) {
    %c0_i32 = arith.constant 0 : i32
    %c0_i32_0 = arith.constant 0 : i32
    %c0_i32_1 = arith.constant 0 : i32
    %c0_i32_2 = arith.constant 0 : i32
    return %c0_i32, %c0_i32_0, %c0_i32_1 : i32, i32, i32
  }
  func.func @transform_14(%arg0: i32) -> (i32, i32, i32) {
    %c0_i32 = arith.constant 0 : i32
    %c0_i32_0 = arith.constant 0 : i32
    %c0_i32_1 = arith.constant 0 : i32
    %c0_i32_2 = arith.constant 0 : i32
    return %c0_i32, %c0_i32_0, %c0_i32_1 : i32, i32, i32
  }
  func.func @transform_15(%arg0: i32) -> (i32, i32) {
    %c0_i32 = arith.constant 0 : i32
    %c0_i32_0 = arith.constant 0 : i32
    %c0_i32_1 = arith.constant 0 : i32
    return %c0_i32, %c0_i32_0 : i32, i32
  }
  func.func @transform_16(%arg0: i32) -> (i32, i32) {
    %c0_i32 = arith.constant 0 : i32
    %c0_i32_0 = arith.constant 0 : i32
    %c0_i32_1 = arith.constant 0 : i32
    return %c0_i32, %c0_i32_0 : i32, i32
  }
  func.func @transform_17(%arg0: i32) -> (i32, i32) {
    %c0_i32 = arith.constant 0 : i32
    %c0_i32_0 = arith.constant 0 : i32
    %c0_i32_1 = arith.constant 0 : i32
    return %c0_i32, %c0_i32_0 : i32, i32
  }
}

</mosaic_0001>

<bundles_post_ra>
// kernel: tpu_custom_call.1
= control target key start
LH: loop header
LB: loop body
LE: loop exit
PB: predicated region body
PF: predicated region fallthrough
CT: control target
= control target key end

     0   :  { %s2997_s0 = inlined_call_operand.vmem [shape: f32[16,16], index: 0, kind: input, shape index: {}]   ;;  %s2998_s1 = inlined_call_operand.vmem [shape: f32[16,32], index: 1, kind: input, shape index: {}]   ;;  %s2999_s2 = inlined_call_operand.vmem [shape: f32[1,32], index: 2, kind: input, shape index: {}]   ;;  %s3000_s3 = inlined_call_operand.vmem [shape: f32[2,32,96], index: 3, kind: input, shape index: {}]   ;;  %s3001_s4 = inlined_call_operand.vmem [shape: f32[2,1,96], index: 4, kind: input, shape index: {}]   ;;  %s3002_s5 = inlined_call_operand.vmem [shape: f32[2,32,32], index: 5, kind: input, shape index: {}]   ;;  %s3003_s6 = inlined_call_operand.vmem [shape: f32[2,1,32], index: 6, kind: input, shape index: {}]   ;;  %s3004_s7 = inlined_call_operand.vmem [shape: f32[2,32,64], index: 7, kind: input, shape index: {}]   ;;  %s3005_s8 = inlined_call_operand.vmem [shape: f32[2,1,64], index: 8, kind: input, shape index: {}]   ;;  %s3006_s9 = inlined_call_operand.vmem [shape: f32[2,64,32], index: 9, kind: input, shape index: {}]   ;;  %s3007_s10 = inlined_call_operand.vmem [shape: f32[2,1,32], index: 10, kind: input, shape index: {}]   ;;  %s3008_s11 = inlined_call_operand.vmem [shape: f32[2,1,32], index: 11, kind: input, shape index: {}]   ;;  %s3009_s12 = inlined_call_operand.vmem [shape: f32[2,1,32], index: 12, kind: input, shape index: {}]   ;;  %s3010_s13 = inlined_call_operand.vmem [shape: f32[2,1,32], index: 13, kind: input, shape index: {}]   ;;  %s3011_s14 = inlined_call_operand.vmem [shape: f32[2,1,32], index: 14, kind: input, shape index: {}]   ;;  %s3012_s15 = inlined_call_operand.vmem [shape: f32[64,32], index: 15, kind: input, shape index: {}]   ;;  %s3013_s16 = inlined_call_operand.vmem [shape: f32[64,16], index: 16, kind: input, shape index: {}]   ;;  %s3014_s17 = inlined_call_operand.hbm [shape: f32[16,32], index: 17, kind: output, shape index: {}]  }
   0x1   :  { %3017 = sst [smem:[#allocation5_spill]] %s2997_s0 }
   0x2   :  { %3018 = sst [smem:[#allocation6_spill]] %s2998_s1 }
   0x3   :  { %s3019_s26 = sld [smem:[#allocation6_spill]]  ;;  %vm68_vm0 = vcmask 130048  }
   0x4   :  { %s3020_s30 = sld [smem:[#allocation5_spill]] }
   0x9   :  { %v60_v0 = vld [vmem:[%s3019_s26 + $0x8] sm:$0xff]  ;;  %v59_v1 = vld [vmem:[%s3019_s26] sm:$0xff] }
   0xa   :  { %v57_v2 = vld [vmem:[%s3020_s30] sm:$0xff]  ;;  %2114 = vmatprep.subr.mxu0 %v60_v0 }
   0xb   :  { %2118 = vmatprep.mubr.msk.f32.mxu0 %vm68_vm0, %v57_v2 }
   0xc   :  { %22 = vsyncpa [#allocation3], 0  ;;  %2115 = vmatpush3.msra.mxu0 %v60_v0  ;;  %v58_v3 = vld [vmem:[%s3020_s30 + $0x8] sm:$0xff]  ;;  %v169_v4 = vld [vmem:[%s3000_s3 + $0x18] sm:$0xff]  ;;  %vm177_vm1 = vcmask 261120   ;;  %s2404_s18 = smov 96  }
   0xd   :  { %2116 = vmatprep.subr.mxu0 %v59_v1  ;;  %v168_v5 = vld [vmem:[%s3000_s3 + $0x10] sm:$0xff]  ;;  %v167_v6 = vld [vmem:[%s3000_s3 + $0x8] sm:$0xff]  ;;  %v166_v7 = vld [vmem:[%s3000_s3] sm:$0xff]  ;;  %vm895_vm2 = vcmask 523264   ;;  %s2406_s22 = smov [#allocation2]  }
   0xe   :  { %2117 = vmatpush3.msra.mxu0 %v59_v1  ;;  %v1915_v9 = vld [vmem:[%s2999_s2] ss:$0 sm:$0xff]  ;;  %v2560_v22 = vld [vmem:[%s3012_s15 + $0x8] sm:$0xff]  ;;  %v2566_v23 = vld [vmem:[%s3012_s15 + $0x10] sm:$0xff] }
   0xf   :  { %2119 = vmatmul.mubr.msk.f32.vlgmr.msra.gmra.mxu0 %vm68_vm0, %v58_v3  ;;  %2121 = vmatprep.subr.mxu0 %v169_v4  ;;  %v1918_v13 = vld [vmem:[%s3001_s4] ss:$0 sm:$0xff]  ;;  %v2576_v26 = vld [vmem:[%s3012_s15 + $0x18] sm:$0xff]  ;;  %v2592_v30 = vld [vmem:[%s3012_s15 + $0x28] sm:$0xff] }
  0x10   :  { %2122 = vmatpush3.msra.mxu0 %v169_v4  ;;  %v2544_v17 = vld [vmem:[%s3012_s15] sm:$0xff]  ;;  %v2598_v31 = vld [vmem:[%s3012_s15 + $0x30] sm:$0xff]  ;;  %v2608_v34 = vld [vmem:[%s3012_s15 + $0x38] sm:$0xff] }
  0x11   :  { %2123 = vmatprep.subr.mxu0 %v168_v5  ;;  %v2582_v27 = vld [vmem:[%s3012_s15 + $0x20] sm:$0xff]  ;;  %v2618_v36 = vld [vmem:[%s3013_s16 + $0x8] sm:$0xff]  ;;  %v2631_v43 = vld [vmem:[%s3013_s16 + $0x18] sm:$0xff] }
  0x12   :  { %2124 = vmatpush3.msra.mxu0 %v168_v5  ;;  %v2623_v38 = vld [vmem:[%s3013_s16] sm:$0xff]  ;;  %v2636_v45 = vld [vmem:[%s3013_s16 + $0x10] sm:$0xff]  ;;  %v2644_v50 = vld [vmem:[%s3013_s16 + $0x28] sm:$0xff] }
  0x13   :  { %2125 = vmatprep.subr.mxu0 %v167_v6  ;;  %v2652_v56 = vld [vmem:[%s3013_s16 + $0x20] sm:$0xff]  ;;  %v2659_v61 = vld [vmem:[%s3013_s16 + $0x30] sm:$0xff]  ;;  %v2666_v0 = vld [vmem:[%s3013_s16 + $0x38] sm:$0xff]  ;;  %s2405_s16 = smov 64  }
  0x14   :  { %2126 = vmatpush3.msra.mxu0 %v167_v6 }
  0x15   :  { %2127 = vmatprep.subr.mxu0 %v166_v7 }
  0x16   :  { %2128 = vmatpush3.msra.mxu0 %v166_v7 }
  0xcf   :  { %v2120_v8 = vpop.f32.mrf.mxu0 }
  0xd0   :  { %v2530_v12 = vadd.f32 %v2120_v8, %v1915_v9 }
  0xd1   :  { %v141_v10 = vpop.f32.mrf.mxu0 }
  0xd2   :  { %v2528_v11 = vadd.f32 %v1915_v9, %v141_v10 }
  0xd4   :  { %2129 = vmatprep.mubr.msk.f32.mxu0 %vm177_vm1, %v2528_v11 }
  0xd5   :  { %2130 = vmatmul.mubr.msk.f32.vlgmr.msra.gmra.mxu0 %vm177_vm1, %v2530_v12 }
 0x195   :  { %v2131_v14 = vpop.f32.mrf.mxu0 }
 0x196   :  { %v2539_v15 = vadd.f32 %v2131_v14, %v1918_v13 }
 0x197   :  { %v250_v16 = vpop.f32.mrf.mxu0 }
 0x198   :  { %v2546_v18 = vadd.f32 %v1918_v13, %v250_v16  ;;  %271 = vrot.lane.b32.xlu0 %v2539_v15, %s2404_s18  ;;  %v260_v24 = vmul.f32 %v2539_v15, %v2560_v22  ;;  %v262_v28 = vmul.f32 %v2539_v15, %v2576_v26  ;;  %v264_v32 = vmul.f32 %v2539_v15, %v2592_v30 }
 0x199   :  { %v266_v35 = vmul.f32 %v2539_v15, %v2608_v34 }
 0x19a   :  { %v259_v19 = vmul.f32 %v2546_v18, %v2544_v17  ;;  %v261_v25 = vmul.f32 %v2546_v18, %v2566_v23  ;;  %v263_v29 = vmul.f32 %v2546_v18, %v2582_v27  ;;  %v265_v33 = vmul.f32 %v2546_v18, %v2598_v31 }
 0x19c   :  { %269 = vrot.lane.b32.xlu0 %v2546_v18, %s2404_s18  ;;  %2136 = vmatprep.mubr.msk.f32.mxu0 %vm177_vm1, %v259_v19 }
 0x20a   :  { %v272_v20 = vpop.permute.xlu0 %271 }
 0x20b   :  { %2132 = vmatprep.subr.msk.mxu0 %vm177_vm1, %v272_v20 }
 0x20c   :  { %2133 = vmatpush3.xpose.msk.msra.mxu0 %vm177_vm1, %v272_v20 }
 0x20e   :  { %v270_v21 = vpop.permute.xlu0 %269 }
 0x20f   :  { %2134 = vmatprep.subr.msk.mxu0 %vm177_vm1, %v270_v21 }
 0x210   :  { %2135 = vmatpush3.xpose.msk.msra.mxu0 %vm177_vm1, %v270_v21 }
 0x213   :  { %2137 = vmatmul.mubr.msk.f32.vlgmr.msra.gmra.mxu0 %vm177_vm1, %v260_v24 }
 0x214   :  { %2139 = vmatprep.mubr.msk.f32.mxu0 %vm177_vm1, %v261_v25 }
 0x217   :  { %2140 = vmatmul.mubr.msk.f32.gmra.mxu0 %vm177_vm1, %v262_v28 }
 0x218   :  { %2142 = vmatprep.mubr.msk.f32.mxu0 %vm177_vm1, %v263_v29 }
 0x21b   :  { %2143 = vmatmul.mubr.msk.f32.gmra.mxu0 %vm177_vm1, %v264_v32 }
 0x21c   :  { %2145 = vmatprep.mubr.msk.f32.mxu0 %vm177_vm1, %v265_v33 }
 0x21f   :  { %2146 = vmatmul.mubr.msk.f32.gmra.mxu0 %vm177_vm1, %v266_v35 }
 0x2d3   :  { %v2138_v37 = vpop.f32.mrf.mxu0 }
 0x2d4   :  { %v373_v39 = vadd.f32 %v2138_v37, %v2618_v36 }
 0x2d5   :  { %v367_v40 = vpop.f32.mrf.mxu0 }
 0x2d6   :  { %v368_v41 = vadd.f32 %v367_v40, %v2623_v38  ;;  %v409_v42 = vsel %vm68_vm0, %v373_v39, -inf }
 0x2d7   :  { %410 = vmax.xlane.f32.xlu1 %v409_v42  ;;  %v2141_v44 = vpop.f32.mrf.mxu0 }
 0x2d8   :  { %v383_v47 = vadd.f32 %v2141_v44, %v2631_v43  ;;  %v406_v49 = vsel %vm68_vm0, %v368_v41, -inf }
 0x2d9   :  { %v377_v46 = vpop.f32.mrf.mxu0 }
 0x2da   :  { %v378_v48 = vadd.f32 %v377_v46, %v2636_v45  ;;  %v415_v55 = vsel %vm68_vm0, %v383_v47, -inf }
 0x2db   :  { %v2144_v51 = vpop.f32.mrf.mxu0  ;;  %407 = vmax.xlane.f32.xlu1 %v406_v49 }
 0x2dc   :  { %v412_v52 = vsel %vm68_vm0, %v378_v48, -inf  ;;  %v393_v54 = vadd.f32 %v2144_v51, %v2644_v50 }
 0x2dd   :  { %v387_v53 = vpop.f32.mrf.mxu0  ;;  %413 = vmax.xlane.f32.xlu0 %v412_v52 }
 0x2de   :  { %v388_v58 = vadd.f32 %v387_v53, %v2652_v56  ;;  %v421_v59 = vsel %vm68_vm0, %v393_v54, -inf }
 0x2df   :  { %v2147_v57 = vpop.f32.mrf.mxu0  ;;  %416 = vmax.xlane.f32.xlu1 %v415_v55 }
 0x2e0   :  { %v418_v63 = vsel %vm68_vm0, %v388_v58, -inf  ;;  %v403_v1 = vadd.f32 %v2147_v57, %v2666_v0 }
 0x2e1   :  { %v397_v60 = vpop.f32.mrf.mxu0 }
 0x2e2   :  { %v398_v62 = vadd.f32 %v397_v60, %v2659_v61  ;;  %v427_v3 = vsel %vm68_vm0, %v403_v1, -inf }
 0x2e3   :  { %422 = vmax.xlane.f32.xlu1 %v421_v59 }
 0x2e4   :  { %v424_v2 = vsel %vm68_vm0, %v398_v62, -inf }
 0x2e7   :  { %419 = vmax.xlane.f32.xlu1 %v418_v63 }
 0x2eb   :  { %425 = vmax.xlane.f32.xlu1 %v424_v2 }
 0x2ef   :  { %428 = vmax.xlane.f32.xlu1 %v427_v3 }
 0x360   :  { %v411_v4 = vpop.xlane.xlu1 %410 }
 0x361   :  { %v431_v5 = vsub.f32 %v373_v39, %v411_v4 }
 0x363   :  { %v440_v6 = vmul.f32 1.442695, %v431_v5 }
 0x364   :  { %v408_v7 = vpop.xlane.xlu1 %407 }
 0x365   :  { %2294 = vpow2.f32 %v440_v6  ;;  %v430_v8 = vsub.f32 %v368_v41, %v408_v7 }
 0x366   :  { %v414_v9 = vpop.xlane.xlu0 %413 }
 0x367   :  { %v438_v10 = vmul.f32 1.442695, %v430_v8  ;;  %v432_v13 = vsub.f32 %v378_v48, %v414_v9 }
 0x368   :  { %v417_v14 = vpop.xlane.xlu1 %416 }
 0x369   :  { %2296 = vpow2.f32 %v438_v10  ;;  %v442_v16 = vmul.f32 1.442695, %v432_v13  ;;  %v433_v19 = vsub.f32 %v383_v47, %v417_v14 }
 0x36b   :  { %2298 = vpow2.f32 %v442_v16  ;;  %v444_v20 = vmul.f32 1.442695, %v433_v19 }
 0x36c   :  { %v423_v21 = vpop.xlane.xlu1 %422 }
 0x36d   :  { %2300 = vpow2.f32 %v444_v20  ;;  %v435_v24 = vsub.f32 %v393_v54, %v423_v21 }
 0x36f   :  { %v448_v25 = vmul.f32 1.442695, %v435_v24 }
 0x370   :  { %v420_v28 = vpop.xlane.xlu1 %419 }
 0x371   :  { %2302 = vpow2.f32 %v448_v25  ;;  %v434_v29 = vsub.f32 %v388_v58, %v420_v28 }
 0x372   :  { %v2671_v32 = vpop.eup %2294 }
 0x373   :  { %v446_v33 = vmul.f32 1.442695, %v434_v29  ;;  %v457_v35 = vsel %vm68_vm0, %v2671_v32, 0.0 }
 0x374   :  { %458 = vadd.xlane.f32.xlu1 %v457_v35  ;;  %v426_v37 = vpop.xlane.xlu1 %425 }
 0x375   :  { %2304 = vpow2.f32 %v446_v33  ;;  %v436_v39 = vsub.f32 %v398_v62, %v426_v37  ;;  %v646_v37 = vld [vmem:[%s3002_s5 + $0x18] sm:$0xff] }
 0x376   :  { %v2297_v40 = vpop.eup %2296  ;;  %2164 = vmatprep.subr.mxu0 %v646_v37 }
 0x377   :  { %v450_v41 = vmul.f32 1.442695, %v436_v39  ;;  %v454_v42 = vsel %vm68_vm0, %v2297_v40, 0.0  ;;  %2165 = vmatpush3.msra.mxu0 %v646_v37  ;;  %v645_v39 = vld [vmem:[%s3002_s5 + $0x10] sm:$0xff] }
 0x378   :  { %v2299_v44 = vpop.eup %2298  ;;  %455 = vadd.xlane.f32.xlu1 %v454_v42  ;;  %v429_v46 = vpop.xlane.xlu1 %428  ;;  %2166 = vmatprep.subr.mxu0 %v645_v39 }
 0x379   :  { %2306 = vpow2.f32 %v450_v41  ;;  %v437_v47 = vsub.f32 %v403_v1, %v429_v46  ;;  %v460_v51 = vsel %vm68_vm0, %v2299_v44, 0.0  ;;  %2167 = vmatpush3.msra.mxu0 %v645_v39  ;;  %v643_v41 = vld [vmem:[%s3002_s5] sm:$0xff] }
 0x37a   :  { %v2301_v48 = vpop.eup %2300 }
 0x37b   :  { %v452_v49 = vmul.f32 1.442695, %v437_v47  ;;  %v463_v52 = vsel %vm68_vm0, %v2301_v48, 0.0 }
 0x37c   :  { %461 = vadd.xlane.f32.xlu1 %v460_v51  ;;  %464 = vadd.xlane.f32.xlu0 %v463_v52 }
 0x37d   :  { %2308 = vpow2.f32 %v452_v49 }
 0x37e   :  { %v2303_v53 = vpop.eup %2302 }
 0x37f   :  { %v469_v54 = vsel %vm68_vm0, %v2303_v53, 0.0 }
 0x380   :  { %470 = vadd.xlane.f32.xlu0 %v469_v54 }
 0x382   :  { %v2305_v55 = vpop.eup %2304 }
 0x383   :  { %v466_v57 = vsel %vm68_vm0, %v2305_v55, 0.0 }
 0x384   :  { %467 = vadd.xlane.f32.xlu1 %v466_v57 }
 0x386   :  { %v2307_v58 = vpop.eup %2306 }
 0x387   :  { %v472_v59 = vsel %vm68_vm0, %v2307_v58, 0.0 }
 0x388   :  { %473 = vadd.xlane.f32.xlu1 %v472_v59 }
 0x38a   :  { %v2309_v60 = vpop.eup %2308 }
 0x38b   :  { %v475_v62 = vsel %vm68_vm0, %v2309_v60, 0.0 }
 0x38c   :  { %476 = vadd.xlane.f32.xlu0 %v475_v62 }
 0x399   :  { %496 = vrot.lane.b32.xlu1 %v2539_v15, %s2405_s16 }
 0x3a2   :  { %494 = vrot.lane.b32.xlu0 %v2546_v18, %s2405_s16 }
 0x3fd   :  { %v459_v63 = vpop.xlane.xlu1 %458 }
 0x401   :  { %v456_v1 = vpop.xlane.xlu1 %455 }
 0x402   :  { %2310 = vrcp.f32 %v456_v1 }
 0x403   :  { %2312 = vrcp.f32 %v459_v63 }
 0x405   :  { %v462_v2 = vpop.xlane.xlu1 %461  ;;  %v465_v3 = vpop.xlane.xlu0 %464 }
 0x406   :  { %2314 = vrcp.f32 %v462_v2 }
 0x407   :  { %2316 = vrcp.f32 %v465_v3 }
 0x409   :  { %v471_v6 = vpop.xlane.xlu0 %470 }
 0x40d   :  { %v468_v4 = vpop.xlane.xlu1 %467 }
 0x40e   :  { %2318 = vrcp.f32 %v468_v4 }
 0x40f   :  { %v2311_v5 = vpop.eup %2310  ;;  %2320 = vrcp.f32 %v471_v6  ;;  %v1939_v6 = vld [vmem:[%s3003_s6] ss:$0 sm:$0xff] }
 0x410   :  { %v486_v7 = vmul.f32 %v2311_v5, %v2297_v40  ;;  %v2313_v9 = vpop.eup %2312  ;;  %v644_v40 = vld [vmem:[%s3002_s5 + $0x8] sm:$0xff] }
 0x411   :  { %v474_v8 = vpop.xlane.xlu1 %473  ;;  %v487_v14 = vmul.f32 %v2313_v9, %v2671_v32  ;;  %2168 = vmatprep.subr.mxu0 %v644_v40 }
 0x412   :  { %2152 = vmatprep.mubr.msk.f32.mxu1 %vm68_vm0, %v486_v7  ;;  %2322 = vrcp.f32 %v474_v8  ;;  %2169 = vmatpush3.msra.mxu0 %v644_v40 }
 0x413   :  { %v2315_v10 = vpop.eup %2314  ;;  %2170 = vmatprep.subr.mxu0 %v643_v41 }
 0x414   :  { %v2317_v16 = vpop.eup %2316  ;;  %v488_v19 = vmul.f32 %v2315_v10, %v2299_v44  ;;  %2171 = vmatpush3.msra.mxu0 %v643_v41 }
 0x415   :  { %v477_v15 = vpop.xlane.xlu0 %476  ;;  %v497_v18 = vpop.permute.xlu1 %496  ;;  %v489_v21 = vmul.f32 %v2317_v16, %v2301_v48 }
 0x416   :  { %2324 = vrcp.f32 %v477_v15  ;;  %2148 = vmatprep.subr.mxu1 %v497_v18 }
 0x417   :  { %2149 = vmatpush3.msra.mxu1 %v497_v18 }
 0x419   :  { %v495_v13 = vpop.permute.xlu0 %494 }
 0x41a   :  { %2150 = vmatprep.subr.mxu1 %v495_v13 }
 0x41b   :  { %2151 = vmatpush3.msra.mxu1 %v495_v13  ;;  %v2319_v20 = vpop.eup %2318 }
 0x41c   :  { %2153 = vmatmul.mubr.msk.f32.vlgmr.msra.gmra.mxu1 %vm68_vm0, %v487_v14  ;;  %v2321_v24 = vpop.eup %2320  ;;  %v490_v25 = vmul.f32 %v2319_v20, %v2305_v55 }
 0x41d   :  { %2155 = vmatprep.mubr.msk.f32.mxu1 %vm68_vm0, %v488_v19  ;;  %v491_v29 = vmul.f32 %v2321_v24, %v2303_v53  ;;  %v787_v24 = vld [vmem:[%s3004_s7 + $0x8] sm:$0xff] }
 0x41f   :  { %v2323_v28 = vpop.eup %2322 }
 0x420   :  { %2156 = vmatmul.mubr.msk.f32.gmra.mxu1 %vm68_vm0, %v489_v21  ;;  %v492_v35 = vmul.f32 %v2323_v28, %v2307_v58  ;;  %v887_v28 = vld [vmem:[%s3006_s9 + $0x38] sm:$0xff] }
 0x421   :  { %2158 = vmatprep.mubr.msk.f32.mxu1 %vm68_vm0, %v490_v25  ;;  %v786_v25 = vld [vmem:[%s3004_s7] sm:$0xff]  ;;  %2186 = vmatprep.subr.mxu0 %v887_v28 }
 0x423   :  { %v2325_v33 = vpop.eup %2324 }
 0x424   :  { %2159 = vmatmul.mubr.msk.f32.gmra.mxu1 %vm68_vm0, %v491_v29  ;;  %v493_v32 = vmul.f32 %v2325_v33, %v2309_v60  ;;  %v886_v29 = vld [vmem:[%s3006_s9 + $0x30] sm:$0xff]  ;;  %v885_v33 = vld [vmem:[%s3006_s9 + $0x28] sm:$0xff] }
 0x425   :  { %2161 = vmatprep.mubr.msk.f32.mxu1 %vm68_vm0, %v492_v35  ;;  %v884_v35 = vld [vmem:[%s3006_s9 + $0x20] sm:$0xff] }
 0x428   :  { %2162 = vmatmul.mubr.msk.f32.gmra.mxu1 %vm68_vm0, %v493_v32 }
 0x4dc   :  { %v2154_v42 = vpop.f32.mrf.mxu1 }
 0x4dd   :  { %v630_v55 = vmul.f32 %v2154_v42, %v2560_v22 }
 0x4de   :  { %v590_v44 = vpop.f32.mrf.mxu1 }
 0x4df   :  { %v629_v53 = vmul.f32 %v590_v44, %v2544_v17 }
 0x4e0   :  { %v2157_v46 = vpop.f32.mrf.mxu1 }
 0x4e1   :  { %v632_v51 = vmul.f32 %v2157_v46, %v2576_v26 }
 0x4e2   :  { %v600_v47 = vpop.f32.mrf.mxu1 }
 0x4e3   :  { %v631_v49 = vmul.f32 %v600_v47, %v2566_v23  ;;  %v638_v60 = vadd.f32 %v632_v51, %v630_v55 }
 0x4e4   :  { %v2160_v48 = vpop.f32.mrf.mxu1 }
 0x4e5   :  { %v634_v57 = vmul.f32 %v2160_v48, %v2592_v30  ;;  %v637_v59 = vadd.f32 %v631_v49, %v629_v53 }
 0x4e6   :  { %v610_v52 = vpop.f32.mrf.mxu1 }
 0x4e7   :  { %v633_v54 = vmul.f32 %v610_v52, %v2582_v27  ;;  %v640_v3 = vadd.f32 %v638_v60, %v634_v57 }
 0x4e8   :  { %v2163_v58 = vpop.f32.mrf.mxu1 }
 0x4e9   :  { %v636_v62 = vmul.f32 %v2163_v58, %v2608_v34  ;;  %v639_v1 = vadd.f32 %v637_v59, %v633_v54  ;;  %v1942_v58 = vld [vmem:[%s3008_s11] ss:$0 sm:$0xff] }
 0x4ea   :  { %v620_v63 = vpop.f32.mrf.mxu1 }
 0x4eb   :  { %v635_v2 = vmul.f32 %v620_v63, %v2598_v31  ;;  %v642_v5 = vadd.f32 %v640_v3, %v636_v62 }
 0x4ed   :  { %v641_v4 = vadd.f32 %v639_v1, %v635_v2  ;;  %v1943_v1 = vld [vmem:[%s3009_s12] ss:$0 sm:$0xff] }
 0x4ef   :  { %2172 = vmatprep.mubr.msk.f32.mxu0 %vm177_vm1, %v641_v4 }
 0x4f0   :  { %2173 = vmatmul.mubr.msk.f32.vlgmr.msra.gmra.mxu0 %vm177_vm1, %v642_v5  ;;  %v883_v5 = vld [vmem:[%s3006_s9 + $0x18] sm:$0xff] }
 0x4f1   :  { %2187 = vmatpush3.msra.mxu0 %v887_v28 }
 0x4f2   :  { %2188 = vmatprep.subr.mxu0 %v886_v29 }
 0x4f3   :  { %2189 = vmatpush3.msra.mxu0 %v886_v29 }
 0x4f4   :  { %2190 = vmatprep.subr.mxu0 %v885_v33 }
 0x4f5   :  { %2191 = vmatpush3.msra.mxu0 %v885_v33 }
 0x4f6   :  { %2192 = vmatprep.subr.mxu0 %v884_v35 }
 0x4f7   :  { %2193 = vmatpush3.msra.mxu0 %v884_v35 }
 0x4f8   :  { %2194 = vmatprep.subr.mxu0 %v883_v5 }
 0x4f9   :  { %2195 = vmatpush3.msra.mxu0 %v883_v5 }
 0x5b0   :  { %v2174_v7 = vpop.f32.mrf.mxu0 }
 0x5b1   :  { %v732_v8 = vadd.f32 %v2174_v7, %v1939_v6  ;;  %v881_v7 = vld [vmem:[%s3006_s9 + $0x8] sm:$0xff] }
 0x5b2   :  { %v726_v15 = vpop.f32.mrf.mxu0 }
 0x5b3   :  { %v736_v18 = vadd.f32 %v732_v8, %v2530_v12  ;;  %v727_v9 = vadd.f32 %v1939_v6, %v726_v15  ;;  %v789_v12 = vld [vmem:[%s3004_s7 + $0x18] sm:$0xff]  ;;  %v882_v6 = vld [vmem:[%s3006_s9 + $0x10] sm:$0xff]  ;;  %v880_v8 = vld [vmem:[%s3006_s9] sm:$0xff] }
 0x5b4   :  { %2175 = vmatprep.subr.mxu1 %v789_v12  ;;  %2196 = vmatprep.subr.mxu0 %v882_v6  ;;  %v1944_v15 = vld [vmem:[%s3005_s8] ss:$0 sm:$0xff] }
 0x5b5   :  { %v735_v10 = vadd.f32 %v727_v9, %v2528_v11  ;;  %v742_v13 = vsel %vm177_vm1, %v736_v18, 0.0  ;;  %v749_v14 = vmul.f32 %v736_v18, %v736_v18  ;;  %v788_v11 = vld [vmem:[%s3004_s7 + $0x10] sm:$0xff]  ;;  %2176 = vmatpush3.msra.mxu1 %v789_v12  ;;  %2197 = vmatpush3.msra.mxu0 %v882_v6 }
 0x5b6   :  { %743 = vadd.xlane.f32.xlu0 %v742_v13  ;;  %2177 = vmatprep.subr.mxu1 %v788_v11 }
 0x5b7   :  { %v739_v16 = vsel %vm177_vm1, %v735_v10, 0.0  ;;  %v748_v19 = vmul.f32 %v735_v10, %v735_v10  ;;  %v753_v20 = vsel %vm177_vm1, %v749_v14, 0.0  ;;  %2178 = vmatpush3.msra.mxu1 %v788_v11  ;;  %2198 = vmatprep.subr.mxu0 %v881_v7 }
 0x5b8   :  { %740 = vadd.xlane.f32.xlu1 %v739_v16  ;;  %2179 = vmatprep.subr.mxu1 %v787_v24 }
 0x5b9   :  { %v750_v21 = vsel %vm177_vm1, %v748_v19, 0.0  ;;  %2180 = vmatpush3.msra.mxu1 %v787_v24  ;;  %2199 = vmatpush3.msra.mxu0 %v881_v7  ;;  %v1947_v19 = vld [vmem:[%s3007_s10] ss:$0 sm:$0xff] }
 0x5ba   :  { %754 = vadd.xlane.f32.xlu0 %v753_v20  ;;  %2181 = vmatprep.subr.mxu1 %v786_v25  ;;  %v1951_v7 = vld [vmem:[%s3011_s14] ss:$0 sm:$0xff] }
 0x5bb   :  { %2182 = vmatpush3.msra.mxu1 %v786_v25  ;;  %2200 = vmatprep.subr.mxu0 %v880_v8 }
 0x5bc   :  { %751 = vadd.xlane.f32.xlu1 %v750_v21  ;;  %2201 = vmatpush3.msra.mxu0 %v880_v8 }
 0x63f   :  { %v744_v32 = vpop.xlane.xlu0 %743 }
 0x640   :  { %v747_v37 = vmul.f32 0.03125, %v744_v32 }
 0x641   :  { %v741_v39 = vpop.xlane.xlu1 %740 }
 0x642   :  { %v746_v40 = vmul.f32 0.03125, %v741_v39  ;;  %v759_v42 = vmul.f32 %v747_v37, %v747_v37  ;;  %v763_v54 = vsub.f32 %v736_v18, %v747_v37  ;;  %v1955_v39 = vld [vmem:[%s3000_s3 + $0x38] sm:$0xff] }
 0x643   :  { %v755_v41 = vpop.xlane.xlu0 %754  ;;  %2205 = vmatprep.subr.mxu1 %v1955_v39 }
 0x644   :  { %v757_v44 = vmul.f32 0.03125, %v755_v41  ;;  %v758_v47 = vmul.f32 %v746_v40, %v746_v40  ;;  %v762_v57 = vsub.f32 %v735_v10, %v746_v40  ;;  %v1954_v40 = vld [vmem:[%s3000_s3 + $0x30] sm:$0xff]  ;;  %v1953_v41 = vld [vmem:[%s3000_s3 + $0x28] sm:$0xff] }
 0x645   :  { %v752_v46 = vpop.xlane.xlu1 %751 }
 0x646   :  { %v761_v48 = vsub.f32 %v757_v44, %v759_v42  ;;  %v756_v49 = vmul.f32 0.03125, %v752_v46  ;;  %v1952_v42 = vld [vmem:[%s3000_s3 + $0x20] sm:$0xff] }
 0x648   :  { %v765_v51 = vadd.f32 1e-05, %v761_v48  ;;  %v760_v52 = vsub.f32 %v756_v49, %v758_v47 }
 0x64a   :  { %2326 = vrsqrt.f32 %v765_v51  ;;  %v764_v53 = vadd.f32 1e-05, %v760_v52 }
 0x64c   :  { %2328 = vrsqrt.f32 %v764_v53 }
 0x657   :  { %v2327_v55 = vpop.eup %2326 }
 0x658   :  { %v769_v59 = vmul.f32 %v2327_v55, %v763_v54 }
 0x659   :  { %v2329_v60 = vpop.eup %2328 }
 0x65a   :  { %v768_v62 = vmul.f32 %v2329_v60, %v762_v57  ;;  %v777_v63 = vmul.f32 %v1942_v58, %v769_v59 }
 0x65c   :  { %v776_v2 = vmul.f32 %v1942_v58, %v768_v62  ;;  %v785_v4 = vadd.f32 %v1943_v1, %v777_v63 }
 0x65e   :  { %v784_v3 = vadd.f32 %v1943_v1, %v776_v2  ;;  %v1950_v2 = vld [vmem:[%s3010_s13] ss:$0 sm:$0xff] }
 0x660   :  { %2183 = vmatprep.mubr.msk.f32.mxu1 %vm177_vm1, %v784_v3 }
 0x661   :  { %2184 = vmatmul.mubr.msk.f32.vlgmr.msra.gmra.mxu1 %vm177_vm1, %v785_v4 }
 0x662   :  { %2206 = vmatpush3.msra.mxu1 %v1955_v39 }
 0x663   :  { %2207 = vmatprep.subr.mxu1 %v1954_v40 }
 0x664   :  { %2208 = vmatpush3.msra.mxu1 %v1954_v40 }
 0x665   :  { %2209 = vmatprep.subr.mxu1 %v1953_v41 }
 0x666   :  { %2210 = vmatpush3.msra.mxu1 %v1953_v41 }
 0x667   :  { %2211 = vmatprep.subr.mxu1 %v1952_v42 }
 0x668   :  { %2212 = vmatpush3.msra.mxu1 %v1952_v42 }
 0x721   :  { %v2185_v18 = vpop.f32.mrf.mxu1 }
 0x722   :  { %v875_v9 = vadd.f32 %v2185_v18, %v1944_v15 }
 0x723   :  { %v869_v10 = vpop.f32.mrf.mxu1 }
 0x724   :  { %v870_v13 = vadd.f32 %v1944_v15, %v869_v10  ;;  %v879_v16 = vmax.f32 %v875_v9, 0.0  ;;  %v1957_v9 = vld [vmem:[%s3001_s4 + $0x1] ss:$0 sm:$0xff] }
 0x726   :  { %v878_v14 = vmax.f32 %v870_v13, 0.0 }
 0x728   :  { %2202 = vmatprep.mubr.msk.f32.mxu0 %vm895_vm2, %v878_v14 }
 0x729   :  { %2203 = vmatmul.mubr.msk.f32.vlgmr.msra.gmra.mxu0 %vm895_vm2, %v879_v16 }
 0x7e9   :  { %v2204_v20 = vpop.f32.mrf.mxu0 }
 0x7ea   :  { %v974_v21 = vadd.f32 %v2204_v20, %v1947_v19 }
 0x7eb   :  { %v968_v12 = vpop.f32.mrf.mxu0 }
 0x7ec   :  { %v978_v11 = vadd.f32 %v974_v21, %v785_v4  ;;  %v969_v24 = vadd.f32 %v1947_v19, %v968_v12 }
 0x7ee   :  { %v977_v25 = vadd.f32 %v969_v24, %v784_v3  ;;  %v984_v28 = vsel %vm177_vm1, %v978_v11, 0.0  ;;  %v990_v29 = vmul.f32 %v978_v11, %v978_v11 }
 0x7ef   :  { %985 = vadd.xlane.f32.xlu0 %v984_v28 }
 0x7f0   :  { %v981_v33 = vsel %vm177_vm1, %v977_v25, 0.0  ;;  %v989_v35 = vmul.f32 %v977_v25, %v977_v25  ;;  %v994_v32 = vsel %vm177_vm1, %v990_v29, 0.0 }
 0x7f1   :  { %982 = vadd.xlane.f32.xlu1 %v981_v33 }
 0x7f2   :  { %v991_v37 = vsel %vm177_vm1, %v989_v35, 0.0 }
 0x7f3   :  { %995 = vadd.xlane.f32.xlu0 %v994_v32 }
 0x7f5   :  { %992 = vadd.xlane.f32.xlu1 %v991_v37 }
 0x878   :  { %v986_v44 = vpop.xlane.xlu0 %985 }
 0x879   :  { %v988_v46 = vmul.f32 0.03125, %v986_v44 }
 0x87a   :  { %v983_v47 = vpop.xlane.xlu1 %982 }
 0x87b   :  { %v987_v48 = vmul.f32 0.03125, %v983_v47  ;;  %v1000_v51 = vmul.f32 %v988_v46, %v988_v46  ;;  %v1004_v62 = vsub.f32 %v978_v11, %v988_v46 }
 0x87c   :  { %v996_v49 = vpop.xlane.xlu0 %995 }
 0x87d   :  { %v998_v52 = vmul.f32 0.03125, %v996_v49  ;;  %v999_v54 = vmul.f32 %v987_v48, %v987_v48  ;;  %v1003_v1 = vsub.f32 %v977_v25, %v987_v48 }
 0x87e   :  { %v993_v53 = vpop.xlane.xlu1 %992 }
 0x87f   :  { %v1002_v55 = vsub.f32 %v998_v52, %v1000_v51  ;;  %v997_v57 = vmul.f32 0.03125, %v993_v53 }
 0x881   :  { %v1006_v58 = vadd.f32 1e-05, %v1002_v55  ;;  %v1001_v59 = vsub.f32 %v997_v57, %v999_v54 }
 0x883   :  { %2330 = vrsqrt.f32 %v1006_v58  ;;  %v1005_v60 = vadd.f32 1e-05, %v1001_v59 }
 0x885   :  { %2332 = vrsqrt.f32 %v1005_v60 }
 0x890   :  { %v2331_v63 = vpop.eup %2330 }
 0x891   :  { %v1010_v3 = vmul.f32 %v2331_v63, %v1004_v62 }
 0x892   :  { %v2333_v4 = vpop.eup %2332 }
 0x893   :  { %v1009_v5 = vmul.f32 %v2333_v4, %v1003_v1  ;;  %v1018_v6 = vmul.f32 %v1950_v2, %v1010_v3 }
 0x895   :  { %v1017_v8 = vmul.f32 %v1950_v2, %v1009_v5  ;;  %v2802_v18 = vadd.f32 %v1951_v7, %v1018_v6 }
 0x897   :  { %v2800_v15 = vadd.f32 %v1951_v7, %v1017_v8 }
 0x899   :  { %2213 = vmatprep.mubr.msk.f32.mxu1 %vm177_vm1, %v2800_v15 }
 0x89a   :  { %2214 = vmatmul.mubr.msk.f32.vlgmr.msra.gmra.mxu1 %vm177_vm1, %v2802_v18 }
 0x95a   :  { %v2215_v10 = vpop.f32.mrf.mxu1 }
 0x95b   :  { %v2811_v13 = vadd.f32 %v2215_v10, %v1957_v9 }
 0x95c   :  { %v1112_v14 = vpop.f32.mrf.mxu1 }
 0x95d   :  { %v2813_v16 = vadd.f32 %v1957_v9, %v1112_v14  ;;  %1133 = vrot.lane.b32.xlu1 %v2811_v13, %s2404_s18  ;;  %v1122_v12 = vmul.f32 %v2811_v13, %v2560_v22  ;;  %v1126_v22 = vmul.f32 %v2811_v13, %v2592_v30 }
 0x95f   :  { %1131 = vrot.lane.b32.xlu0 %v2813_v16, %s2404_s18  ;;  %v1121_v19 = vmul.f32 %v2813_v16, %v2544_v17  ;;  %v1123_v11 = vmul.f32 %v2813_v16, %v2566_v23  ;;  %v1124_v17 = vmul.f32 %v2811_v13, %v2576_v26  ;;  %v1125_v24 = vmul.f32 %v2813_v16, %v2582_v27 }
 0x960   :  { %v1127_v23 = vmul.f32 %v2813_v16, %v2598_v31  ;;  %v1128_v26 = vmul.f32 %v2811_v13, %v2608_v34 }
 0x961   :  { %2220 = vmatprep.mubr.msk.f32.mxu1 %vm177_vm1, %v1121_v19 }
 0x9cf   :  { %v1134_v20 = vpop.permute.xlu1 %1133 }
 0x9d0   :  { %2216 = vmatprep.subr.msk.mxu1 %vm177_vm1, %v1134_v20 }
 0x9d1   :  { %2217 = vmatpush3.xpose.msk.msra.mxu1 %vm177_vm1, %v1134_v20  ;;  %v1132_v21 = vpop.permute.xlu0 %1131 }
 0x9d2   :  { %2218 = vmatprep.subr.msk.mxu1 %vm177_vm1, %v1132_v21 }
 0x9d5   :  { %2219 = vmatpush3.xpose.msk.msra.mxu1 %vm177_vm1, %v1132_v21 }
 0x9d8   :  { %2221 = vmatmul.mubr.msk.f32.vlgmr.msra.gmra.mxu1 %vm177_vm1, %v1122_v12 }
 0x9d9   :  { %2223 = vmatprep.mubr.msk.f32.mxu1 %vm177_vm1, %v1123_v11 }
 0x9dc   :  { %2224 = vmatmul.mubr.msk.f32.gmra.mxu1 %vm177_vm1, %v1124_v17 }
 0x9dd   :  { %2226 = vmatprep.mubr.msk.f32.mxu1 %vm177_vm1, %v1125_v24 }
 0x9e0   :  { %2227 = vmatmul.mubr.msk.f32.gmra.mxu1 %vm177_vm1, %v1126_v22 }
 0x9e1   :  { %2229 = vmatprep.mubr.msk.f32.mxu1 %vm177_vm1, %v1127_v23 }
 0x9e4   :  { %2230 = vmatmul.mubr.msk.f32.gmra.mxu1 %vm177_vm1, %v1128_v26 }
 0xa98   :  { %v2222_v27 = vpop.f32.mrf.mxu1 }
 0xa99   :  { %v1235_v25 = vadd.f32 %v2222_v27, %v2618_v36 }
 0xa9a   :  { %v1229_v28 = vpop.f32.mrf.mxu1 }
 0xa9b   :  { %v1230_v29 = vadd.f32 %v1229_v28, %v2623_v38  ;;  %v1271_v30 = vsel %vm68_vm0, %v1235_v25, -inf }
 0xa9c   :  { %1272 = vmax.xlane.f32.xlu0 %v1271_v30  ;;  %v2225_v33 = vpop.f32.mrf.mxu1 }
 0xa9d   :  { %v1245_v31 = vadd.f32 %v2225_v33, %v2631_v43  ;;  %v1268_v35 = vsel %vm68_vm0, %v1230_v29, -inf }
 0xa9e   :  { %v1239_v32 = vpop.f32.mrf.mxu1  ;;  %1269 = vmax.xlane.f32.xlu1 %v1268_v35 }
 0xa9f   :  { %v1240_v34 = vadd.f32 %v1239_v32, %v2636_v45  ;;  %v1277_v37 = vsel %vm68_vm0, %v1245_v31, -inf }
 0xaa0   :  { %1278 = vmax.xlane.f32.xlu0 %v1277_v37  ;;  %v2228_v39 = vpop.f32.mrf.mxu1 }
 0xaa1   :  { %v1255_v36 = vadd.f32 %v2228_v39, %v2644_v50  ;;  %v1274_v38 = vsel %vm68_vm0, %v1240_v34, -inf }
 0xaa2   :  { %v1249_v40 = vpop.f32.mrf.mxu1  ;;  %1275 = vmax.xlane.f32.xlu1 %v1274_v38 }
 0xaa3   :  { %v1250_v41 = vadd.f32 %v1249_v40, %v2652_v56  ;;  %v1283_v43 = vsel %vm68_vm0, %v1255_v36, -inf }
 0xaa4   :  { %1284 = vmax.xlane.f32.xlu0 %v1283_v43  ;;  %v2231_v42 = vpop.f32.mrf.mxu1 }
 0xaa5   :  { %v1265_v44 = vadd.f32 %v2231_v42, %v2666_v0  ;;  %v1280_v45 = vsel %vm68_vm0, %v1250_v41, -inf }
 0xaa6   :  { %v1259_v46 = vpop.f32.mrf.mxu1  ;;  %1281 = vmax.xlane.f32.xlu1 %v1280_v45 }
 0xaa7   :  { %v1260_v47 = vadd.f32 %v1259_v46, %v2659_v61  ;;  %v1289_v50 = vsel %vm68_vm0, %v1265_v44, -inf }
 0xaa8   :  { %1290 = vmax.xlane.f32.xlu0 %v1289_v50 }
 0xaa9   :  { %v1286_v48 = vsel %vm68_vm0, %v1260_v47, -inf }
 0xaaa   :  { %1287 = vmax.xlane.f32.xlu1 %v1286_v48 }
 0xb25   :  { %v1273_v49 = vpop.xlane.xlu0 %1272 }
 0xb26   :  { %v1293_v56 = vsub.f32 %v1235_v25, %v1273_v49 }
 0xb27   :  { %v1270_v51 = vpop.xlane.xlu1 %1269 }
 0xb28   :  { %v1302_v52 = vmul.f32 1.442695, %v1293_v56  ;;  %v1292_v53 = vsub.f32 %v1230_v29, %v1270_v51 }
 0xb29   :  { %v1279_v54 = vpop.xlane.xlu0 %1278 }
 0xb2a   :  { %2334 = vpow2.f32 %v1302_v52  ;;  %v1300_v0 = vmul.f32 1.442695, %v1292_v53  ;;  %v1295_v55 = vsub.f32 %v1245_v31, %v1279_v54  ;;  %v1981_v53 = vld [vmem:[%s3002_s5 + $0x38] sm:$0xff]  ;;  %v1980_v54 = vld [vmem:[%s3002_s5 + $0x30] sm:$0xff] }
 0xb2b   :  { %v1276_v57 = vpop.xlane.xlu1 %1275  ;;  %2248 = vmatprep.subr.mxu1 %v1981_v53 }
 0xb2c   :  { %2336 = vpow2.f32 %v1300_v0  ;;  %v1306_v58 = vmul.f32 1.442695, %v1295_v55  ;;  %v1294_v59 = vsub.f32 %v1240_v34, %v1276_v57  ;;  %2249 = vmatpush3.msra.mxu1 %v1981_v53  ;;  %v1979_v0 = vld [vmem:[%s3002_s5 + $0x28] sm:$0xff]  ;;  %v1978_v55 = vld [vmem:[%s3002_s5 + $0x20] sm:$0xff]  ;;  %s1904_s5 = sshll.u32 %s2406_s22, 4  ;;  %s1905_s5 = int_to_ptr.vmem [resolvable:$true] %s1904_s5 }
 0xb2d   :  { %v1285_v61 = vpop.xlane.xlu0 %1284  ;;  %2250 = vmatprep.subr.mxu1 %v1980_v54  ;;  %p2387_p1 = scmp.lt.s32.totalorder %s1905_s5, %s1905_s5 }
 0xb2e   :  { %2338 = vpow2.f32 %v1306_v58  ;;  %v1304_v60 = vmul.f32 1.442695, %v1294_v59  ;;  %v1297_v62 = vsub.f32 %v1255_v36, %v1285_v61  ;;  %2251 = vmatpush3.msra.mxu1 %v1980_v54 }
 0xb2f   :  { %v1282_v63 = vpop.xlane.xlu1 %1281  ;;  %2252 = vmatprep.subr.mxu1 %v1979_v0 }
 0xb30   :  { %2340 = vpow2.f32 %v1304_v60  ;;  %v1310_v1 = vmul.f32 1.442695, %v1297_v62  ;;  %v1296_v2 = vsub.f32 %v1250_v41, %v1282_v63  ;;  %2253 = vmatpush3.msra.mxu1 %v1979_v0  ;;  %v2374_v62 = vld [vmem:[%s3012_s15 + $0x10] sm:$0xff] }
 0xb31   :  { %v1291_v3 = vpop.xlane.xlu0 %1290  ;;  %2254 = vmatprep.subr.mxu1 %v1978_v55 }
 0xb32   :  { %2342 = vpow2.f32 %v1310_v1  ;;  %v1308_v4 = vmul.f32 1.442695, %v1296_v2  ;;  %v1299_v5 = vsub.f32 %v1265_v44, %v1291_v3  ;;  %2255 = vmatpush3.msra.mxu1 %v1978_v55  ;;  %v2375_v1 = vld [vmem:[%s3012_s15 + $0x18] sm:$0xff] }
 0xb33   :  { %v1288_v6 = vpop.xlane.xlu1 %1287 }
 0xb34   :  { %2344 = vpow2.f32 %v1308_v4  ;;  %v1314_v7 = vmul.f32 1.442695, %v1299_v5  ;;  %v1298_v8 = vsub.f32 %v1260_v47, %v1288_v6  ;;  %v2376_v4 = vld [vmem:[%s3012_s15] sm:$0xff] }
 0xb35   :  { %v2377_v6 = vld [vmem:[%s3012_s15 + $0x20] sm:$0xff] }
 0xb36   :  { %2346 = vpow2.f32 %v1314_v7  ;;  %v1312_v9 = vmul.f32 1.442695, %v1298_v8  ;;  %v2378_v8 = vld [vmem:[%s3012_s15 + $0x8] sm:$0xff] }
 0xb37   :  { %v2335_v10 = vpop.eup %2334 }
 0xb38   :  { %2348 = vpow2.f32 %v1312_v9  ;;  %v1319_v14 = vsel %vm68_vm0, %v2335_v10, 0.0 }
 0xb39   :  { %v2337_v19 = vpop.eup %2336  ;;  %1320 = vadd.xlane.f32.xlu0 %v1319_v14 }
 0xb3a   :  { %v1316_v20 = vsel %vm68_vm0, %v2337_v19, 0.0 }
 0xb3b   :  { %v2339_v21 = vpop.eup %2338  ;;  %1317 = vadd.xlane.f32.xlu1 %v1316_v20 }
 0xb3c   :  { %v1325_v12 = vsel %vm68_vm0, %v2339_v21, 0.0 }
 0xb3d   :  { %v2341_v11 = vpop.eup %2340  ;;  %1326 = vadd.xlane.f32.xlu0 %v1325_v12  ;;  %v2380_v12 = vld [vmem:[%s3012_s15 + $0x38] sm:$0xff] }
 0xb3e   :  { %v1322_v17 = vsel %vm68_vm0, %v2341_v11, 0.0 }
 0xb3f   :  { %v2343_v24 = vpop.eup %2342  ;;  %1323 = vadd.xlane.f32.xlu1 %v1322_v17 }
 0xb40   :  { %v1331_v22 = vsel %vm68_vm0, %v2343_v24, 0.0 }
 0xb41   :  { %v2345_v23 = vpop.eup %2344  ;;  %1332 = vadd.xlane.f32.xlu0 %v1331_v22  ;;  %v2381_v22 = vld [vmem:[%s3012_s15 + $0x30] sm:$0xff] }
 0xb42   :  { %v1328_v26 = vsel %vm68_vm0, %v2345_v23, 0.0 }
 0xb43   :  { %v2347_v27 = vpop.eup %2346  ;;  %1329 = vadd.xlane.f32.xlu1 %v1328_v26 }
 0xb44   :  { %v1337_v25 = vsel %vm68_vm0, %v2347_v27, 0.0 }
 0xb45   :  { %v2349_v28 = vpop.eup %2348  ;;  %1338 = vadd.xlane.f32.xlu0 %v1337_v25 }
 0xb46   :  { %v1334_v29 = vsel %vm68_vm0, %v2349_v28, 0.0 }
 0xb47   :  { %1335 = vadd.xlane.f32.xlu1 %v1334_v29 }
 0xb58   :  { %1358 = vrot.lane.b32.xlu1 %v2811_v13, %s2405_s16 }
 0xb5b   :  { %1356 = vrot.lane.b32.xlu0 %v2813_v16, %s2405_s16 }
 0xbc2   :  { %v1321_v30 = vpop.xlane.xlu0 %1320 }
 0xbc4   :  { %v1318_v33 = vpop.xlane.xlu1 %1317 }
 0xbc5   :  { %2350 = vrcp.f32 %v1318_v33 }
 0xbc6   :  { %v1327_v31 = vpop.xlane.xlu0 %1326  ;;  %2352 = vrcp.f32 %v1321_v30 }
 0xbc8   :  { %v1324_v35 = vpop.xlane.xlu1 %1323 }
 0xbc9   :  { %2354 = vrcp.f32 %v1324_v35 }
 0xbca   :  { %v1333_v32 = vpop.xlane.xlu0 %1332  ;;  %2356 = vrcp.f32 %v1327_v31 }
 0xbcc   :  { %v1330_v34 = vpop.xlane.xlu1 %1329 }
 0xbcd   :  { %2358 = vrcp.f32 %v1330_v34 }
 0xbce   :  { %2360 = vrcp.f32 %v1333_v32  ;;  %v1339_v37 = vpop.xlane.xlu0 %1338 }
 0xbd0   :  { %v1336_v39 = vpop.xlane.xlu1 %1335 }
 0xbd1   :  { %2362 = vrcp.f32 %v1336_v39 }
 0xbd2   :  { %v2351_v36 = vpop.eup %2350  ;;  %2364 = vrcp.f32 %v1339_v37  ;;  %v1357_v41 = vpop.permute.xlu0 %1356 }
 0xbd3   :  { %v1348_v13 = vmul.f32 %v2351_v36, %v2337_v19  ;;  %v2353_v38 = vpop.eup %2352 }
 0xbd4   :  { %v1359_v16 = vpop.permute.xlu1 %1358  ;;  %v1349_v43 = vmul.f32 %v2353_v38, %v2335_v10  ;;  %v2379_v10 = vld [vmem:[%s3012_s15 + $0x28] sm:$0xff] }
 0xbd5   :  { %2232 = vmatprep.subr.mxu0 %v1359_v16  ;;  %2236 = vmatprep.mubr.msk.f32.mxu0 %vm68_vm0, %v1348_v13 }
 0xbd6   :  { %v2355_v40 = vpop.eup %2354  ;;  %2233 = vmatpush3.msra.mxu0 %v1359_v16  ;;  %v1991_v16 = vld [vmem:[%s3004_s7 + $0x28] sm:$0xff] }
 0xbd7   :  { %2234 = vmatprep.subr.mxu0 %v1357_v41  ;;  %v1350_v42 = vmul.f32 %v2355_v40, %v2341_v11  ;;  %v2357_v44 = vpop.eup %2356  ;;  %v1990_v40 = vld [vmem:[%s3004_s7 + $0x20] sm:$0xff] }
 0xbd8   :  { %2235 = vmatpush3.msra.mxu0 %v1357_v41  ;;  %v1351_v46 = vmul.f32 %v2357_v44, %v2339_v21  ;;  %v2005_v41 = vld [vmem:[%s3006_s9 + $0x78] sm:$0xff]  ;;  %v2002_v44 = vld [vmem:[%s3006_s9 + $0x60] sm:$0xff] }
 0xbd9   :  { %2237 = vmatmul.mubr.msk.f32.vlgmr.msra.gmra.mxu0 %vm68_vm0, %v1349_v43  ;;  %v2004_v43 = vld [vmem:[%s3006_s9 + $0x70] sm:$0xff]  ;;  %2270 = vmatprep.subr.mxu1 %v2005_v41 }
 0xbda   :  { %v2359_v45 = vpop.eup %2358  ;;  %2239 = vmatprep.mubr.msk.f32.mxu0 %vm68_vm0, %v1350_v42  ;;  %v2003_v42 = vld [vmem:[%s3006_s9 + $0x68] sm:$0xff] }
 0xbdb   :  { %v1352_v47 = vmul.f32 %v2359_v45, %v2345_v23  ;;  %v2361_v50 = vpop.eup %2360 }
 0xbdc   :  { %v1353_v49 = vmul.f32 %v2361_v50, %v2343_v24 }
 0xbdd   :  { %2240 = vmatmul.mubr.msk.f32.gmra.mxu0 %vm68_vm0, %v1351_v46 }
 0xbde   :  { %v2363_v48 = vpop.eup %2362  ;;  %2242 = vmatprep.mubr.msk.f32.mxu0 %vm68_vm0, %v1352_v47 }
 0xbdf   :  { %v1354_v56 = vmul.f32 %v2363_v48, %v2349_v28  ;;  %v2365_v51 = vpop.eup %2364  ;;  %v1983_v28 = vld [vmem:[%s3003_s6 + $0x1] ss:$0 sm:$0xff] }
 0xbe0   :  { %v1355_v52 = vmul.f32 %v2365_v51, %v2347_v27 }
 0xbe1   :  { %2243 = vmatmul.mubr.msk.f32.gmra.mxu0 %vm68_vm0, %v1353_v49 }
 0xbe2   :  { %2245 = vmatprep.mubr.msk.f32.mxu0 %vm68_vm0, %v1354_v56 }
 0xbe5   :  { %2246 = vmatmul.mubr.msk.f32.gmra.mxu0 %vm68_vm0, %v1355_v52 }
 0xc99   :  { %v2238_v57 = vpop.f32.mrf.mxu0 }
 0xc9a   :  { %v1492_v9 = vmul.f32 %v2378_v8, %v2238_v57  ;;  %v2000_v8 = vld [vmem:[%s3006_s9 + $0x50] sm:$0xff] }
 0xc9b   :  { %v1452_v58 = vpop.f32.mrf.mxu0 }
 0xc9c   :  { %v1491_v5 = vmul.f32 %v2376_v4, %v1452_v58 }
 0xc9d   :  { %v2241_v59 = vpop.f32.mrf.mxu0 }
 0xc9e   :  { %v1494_v2 = vmul.f32 %v2375_v1, %v2241_v59 }
 0xc9f   :  { %v1462_v61 = vpop.f32.mrf.mxu0 }
 0xca0   :  { %v1493_v63 = vmul.f32 %v2374_v62, %v1462_v61  ;;  %v1500_v21 = vadd.f32 %v1494_v2, %v1492_v9  ;;  %v1999_v9 = vld [vmem:[%s3006_s9 + $0x48] sm:$0xff] }
 0xca1   :  { %v2244_v60 = vpop.f32.mrf.mxu0 }
 0xca2   :  { %v1496_v14 = vmul.f32 %v2379_v10, %v2244_v60  ;;  %v1499_v20 = vadd.f32 %v1493_v63, %v1491_v5  ;;  %v1988_v60 = vld [vmem:[%s3008_s11 + $0x1] ss:$0 sm:$0xff] }
 0xca3   :  { %v1472_v3 = vpop.f32.mrf.mxu0  ;;  %v1998_v10 = vld [vmem:[%s3006_s9 + $0x40] sm:$0xff] }
 0xca4   :  { %v1495_v7 = vmul.f32 %v2377_v6, %v1472_v3  ;;  %v1502_v26 = vadd.f32 %v1500_v21, %v1496_v14  ;;  %v1989_v3 = vld [vmem:[%s3009_s12 + $0x1] ss:$0 sm:$0xff] }
 0xca5   :  { %v2247_v19 = vpop.f32.mrf.mxu0  ;;  %v1995_v14 = vld [vmem:[%s3005_s8 + $0x1] ss:$0 sm:$0xff] }
 0xca6   :  { %v1498_v11 = vmul.f32 %v2380_v12, %v2247_v19  ;;  %v1501_v24 = vadd.f32 %v1499_v20, %v1495_v7  ;;  %v2001_v7 = vld [vmem:[%s3006_s9 + $0x58] sm:$0xff] }
 0xca7   :  { %v1482_v17 = vpop.f32.mrf.mxu0 }
 0xca8   :  { %v1497_v23 = vmul.f32 %v2381_v22, %v1482_v17  ;;  %v1504_v25 = vadd.f32 %v1502_v26, %v1498_v11 }
 0xcaa   :  { %v1503_v27 = vadd.f32 %v1501_v24, %v1497_v23  ;;  %v2007_v24 = vld [vmem:[%s3007_s10 + $0x1] ss:$0 sm:$0xff] }
 0xcac   :  { %2256 = vmatprep.mubr.msk.f32.mxu1 %vm177_vm1, %v1503_v27 }
 0xcad   :  { %2257 = vmatmul.mubr.msk.f32.vlgmr.msra.gmra.mxu1 %vm177_vm1, %v1504_v25 }
 0xcae   :  { %2271 = vmatpush3.msra.mxu1 %v2005_v41 }
 0xcaf   :  { %2272 = vmatprep.subr.mxu1 %v2004_v43 }
 0xcb0   :  { %2273 = vmatpush3.msra.mxu1 %v2004_v43 }
 0xcb1   :  { %2274 = vmatprep.subr.mxu1 %v2003_v42 }
 0xcb2   :  { %2275 = vmatpush3.msra.mxu1 %v2003_v42 }
 0xcb3   :  { %2276 = vmatprep.subr.mxu1 %v2002_v44 }
 0xcb4   :  { %2277 = vmatpush3.msra.mxu1 %v2002_v44 }
 0xcb5   :  { %2278 = vmatprep.subr.mxu1 %v2001_v7 }
 0xcb6   :  { %2279 = vmatpush3.msra.mxu1 %v2001_v7 }
 0xcb7   :  { %2280 = vmatprep.subr.mxu1 %v2000_v8 }
 0xcb8   :  { %2281 = vmatpush3.msra.mxu1 %v2000_v8 }
 0xcb9   :  { %2282 = vmatprep.subr.mxu1 %v1999_v9 }
 0xcba   :  { %2283 = vmatpush3.msra.mxu1 %v1999_v9 }
 0xcbb   :  { %2284 = vmatprep.subr.mxu1 %v1998_v10 }
 0xcbc   :  { %2285 = vmatpush3.msra.mxu1 %v1998_v10 }
 0xd6d   :  { %v2258_v29 = vpop.f32.mrf.mxu1 }
 0xd6e   :  { %v1596_v30 = vadd.f32 %v2258_v29, %v1983_v28 }
 0xd6f   :  { %v1590_v33 = vpop.f32.mrf.mxu1 }
 0xd70   :  { %v1600_v31 = vadd.f32 %v1596_v30, %v2802_v18  ;;  %v1591_v35 = vadd.f32 %v1983_v28, %v1590_v33  ;;  %v1993_v18 = vld [vmem:[%s3004_s7 + $0x38] sm:$0xff] }
 0xd71   :  { %2259 = vmatprep.subr.mxu0 %v1993_v18 }
 0xd72   :  { %v1599_v32 = vadd.f32 %v1591_v35, %v2800_v15  ;;  %v1608_v34 = vsel %vm177_vm1, %v1600_v31, 0.0  ;;  %v1614_v37 = vmul.f32 %v1600_v31, %v1600_v31  ;;  %v1992_v15 = vld [vmem:[%s3004_s7 + $0x30] sm:$0xff]  ;;  %2260 = vmatpush3.msra.mxu0 %v1993_v18 }
 0xd73   :  { %1609 = vadd.xlane.f32.xlu0 %v1608_v34  ;;  %2261 = vmatprep.subr.mxu0 %v1992_v15 }
 0xd74   :  { %v1605_v39 = vsel %vm177_vm1, %v1599_v32, 0.0  ;;  %v1613_v36 = vmul.f32 %v1599_v32, %v1599_v32  ;;  %v1618_v13 = vsel %vm177_vm1, %v1614_v37, 0.0  ;;  %2262 = vmatpush3.msra.mxu0 %v1992_v15 }
 0xd75   :  { %1606 = vadd.xlane.f32.xlu1 %v1605_v39  ;;  %2263 = vmatprep.subr.mxu0 %v1991_v16 }
 0xd76   :  { %v1615_v38 = vsel %vm177_vm1, %v1613_v36, 0.0  ;;  %2264 = vmatpush3.msra.mxu0 %v1991_v16 }
 0xd77   :  { %1619 = vadd.xlane.f32.xlu0 %v1618_v13  ;;  %2265 = vmatprep.subr.mxu0 %v1990_v40 }
 0xd78   :  { %2266 = vmatpush3.msra.mxu0 %v1990_v40 }
 0xd79   :  { %1616 = vadd.xlane.f32.xlu1 %v1615_v38 }
 0xdfc   :  { %v1610_v45 = vpop.xlane.xlu0 %1609 }
 0xdfd   :  { %v1612_v46 = vmul.f32 0.03125, %v1610_v45 }
 0xdfe   :  { %v1607_v47 = vpop.xlane.xlu1 %1606 }
 0xdff   :  { %v1611_v50 = vmul.f32 0.03125, %v1607_v47  ;;  %v1624_v49 = vmul.f32 %v1612_v46, %v1612_v46  ;;  %v1628_v58 = vsub.f32 %v1600_v31, %v1612_v46  ;;  %v2012_v47 = vld [vmem:[%s3010_s13 + $0x1] ss:$0 sm:$0xff]  ;;  %s2382_s13 = scalar_lea.vmem %s1905_s5, 256 }
 0xe00   :  { %v1620_v48 = vpop.xlane.xlu0 %1619  ;;  %p2383_p0 = scmp.ne.s32.totalorder %s1905_s5, %s2382_s13  ;;  %p2388_p2 = scmp.lt.s32.totalorder %s2382_s13, %s2382_s13 }
 0xe01   :  { %v1622_v56 = vmul.f32 0.03125, %v1620_v48  ;;  %v1623_v52 = vmul.f32 %v1611_v50, %v1611_v50  ;;  %v1627_v61 = vsub.f32 %v1599_v32, %v1611_v50 }
 0xe02   :  { %v1617_v51 = vpop.xlane.xlu1 %1616  ;;  %p2389_p3 = por %p2388_p2, %p2387_p1 }
 0xe03   :  { %v1626_v53 = vsub.f32 %v1622_v56, %v1624_v49  ;;  %v1621_v54 = vmul.f32 0.03125, %v1617_v51  ;;  %v2013_v56 = vld [vmem:[%s3011_s14 + $0x1] ss:$0 sm:$0xff] }
 0xe04   :  { %p2390_p4 = pnand %p2389_p3, %p2383_p0 }
 0xe05   :  { %v1630_v0 = vadd.f32 1e-05, %v1626_v53  ;;  %v1625_v55 = vsub.f32 %v1621_v54, %v1623_v52 }
 0xe07   :  { %2366 = vrsqrt.f32 %v1630_v0  ;;  %v1629_v57 = vadd.f32 1e-05, %v1625_v55 }
 0xe09   :  { %2368 = vrsqrt.f32 %v1629_v57 }
 0xe14   :  { %v2367_v59 = vpop.eup %2366 }
 0xe15   :  { %v1634_v62 = vmul.f32 %v2367_v59, %v1628_v58 }
 0xe16   :  { %v2369_v63 = vpop.eup %2368 }
 0xe17   :  { %v1633_v1 = vmul.f32 %v2369_v63, %v1627_v61  ;;  %v1642_v2 = vmul.f32 %v1988_v60, %v1634_v62 }
 0xe19   :  { %v1641_v4 = vmul.f32 %v1988_v60, %v1633_v1  ;;  %v1650_v6 = vadd.f32 %v1989_v3, %v1642_v2 }
 0xe1b   :  { %v1649_v5 = vadd.f32 %v1989_v3, %v1641_v4 }
 0xe1d   :  { %2267 = vmatprep.mubr.msk.f32.mxu0 %vm177_vm1, %v1649_v5 }
 0xe1e   :  { %2268 = vmatmul.mubr.msk.f32.vlgmr.msra.gmra.mxu0 %vm177_vm1, %v1650_v6 }
 0xede   :  { %v2269_v19 = vpop.f32.mrf.mxu0 }
 0xedf   :  { %v1742_v20 = vadd.f32 %v2269_v19, %v1995_v14 }
 0xee0   :  { %v1736_v21 = vpop.f32.mrf.mxu0 }
 0xee1   :  { %v1737_v12 = vadd.f32 %v1995_v14, %v1736_v21  ;;  %v1746_v17 = vmax.f32 %v1742_v20, 0.0 }
 0xee3   :  { %v1745_v11 = vmax.f32 %v1737_v12, 0.0 }
 0xee5   :  { %2286 = vmatprep.mubr.msk.f32.mxu1 %vm895_vm2, %v1745_v11 }
 0xee6   :  { %2287 = vmatmul.mubr.msk.f32.vlgmr.msra.gmra.mxu1 %vm895_vm2, %v1746_v17 }
 0xfa6   :  { %v2288_v22 = vpop.f32.mrf.mxu1 }
 0xfa7   :  { %v1842_v23 = vadd.f32 %v2288_v22, %v2007_v24 }
 0xfa8   :  { %v1836_v26 = vpop.f32.mrf.mxu1 }
 0xfa9   :  { %v1846_v27 = vadd.f32 %v1842_v23, %v1650_v6  ;;  %v1837_v25 = vadd.f32 %v2007_v24, %v1836_v26 }
 0xfab   :  { %v1845_v28 = vadd.f32 %v1837_v25, %v1649_v5  ;;  %v1854_v29 = vsel %vm177_vm1, %v1846_v27, 0.0  ;;  %v1860_v30 = vmul.f32 %v1846_v27, %v1846_v27 }
 0xfac   :  { %1855 = vadd.xlane.f32.xlu0 %v1854_v29 }
 0xfad   :  { %v1851_v33 = vsel %vm177_vm1, %v1845_v28, 0.0  ;;  %v1859_v31 = vmul.f32 %v1845_v28, %v1845_v28  ;;  %v1864_v35 = vsel %vm177_vm1, %v1860_v30, 0.0 }
 0xfae   :  { %1852 = vadd.xlane.f32.xlu1 %v1851_v33 }
 0xfaf   :  { %v1861_v32 = vsel %vm177_vm1, %v1859_v31, 0.0 }
 0xfb0   :  { %1865 = vadd.xlane.f32.xlu0 %v1864_v35 }
 0xfb2   :  { %1862 = vadd.xlane.f32.xlu1 %v1861_v32 }
0x1035   :  { %v1856_v34 = vpop.xlane.xlu0 %1855 }
0x1036   :  { %v1858_v37 = vmul.f32 0.03125, %v1856_v34 }
0x1037   :  { %v1853_v39 = vpop.xlane.xlu1 %1852 }
0x1038   :  { %v1857_v36 = vmul.f32 0.03125, %v1853_v39  ;;  %v1870_v38 = vmul.f32 %v1858_v37, %v1858_v37  ;;  %v1874_v45 = vsub.f32 %v1846_v27, %v1858_v37 }
0x1039   :  { %v1866_v13 = vpop.xlane.xlu0 %1865 }
0x103a   :  { %v1868_v18 = vmul.f32 0.03125, %v1866_v13  ;;  %v1869_v16 = vmul.f32 %v1857_v36, %v1857_v36  ;;  %v1873_v50 = vsub.f32 %v1845_v28, %v1857_v36 }
0x103b   :  { %v1863_v15 = vpop.xlane.xlu1 %1862 }
0x103c   :  { %v1872_v40 = vsub.f32 %v1868_v18, %v1870_v38  ;;  %v1867_v41 = vmul.f32 0.03125, %v1863_v15 }
0x103e   :  { %v1876_v43 = vadd.f32 1e-05, %v1872_v40  ;;  %v1871_v42 = vsub.f32 %v1867_v41, %v1869_v16 }
0x1040   :  { %2370 = vrsqrt.f32 %v1876_v43  ;;  %v1875_v44 = vadd.f32 1e-05, %v1871_v42 }
0x1042   :  { %2372 = vrsqrt.f32 %v1875_v44 }
0x104d   :  { %v2371_v46 = vpop.eup %2370 }
0x104e   :  { %v1880_v48 = vmul.f32 %v2371_v46, %v1874_v45 }
0x104f   :  { %v2373_v49 = vpop.eup %2372 }
0x1050   :  { %v1879_v51 = vmul.f32 %v2373_v49, %v1873_v50  ;;  %v1888_v52 = vmul.f32 %v2012_v47, %v1880_v48 }
0x1052   :  { %v1887_v53 = vmul.f32 %v2012_v47, %v1879_v51  ;;  %v1896_v54 = vadd.f32 %v2013_v56, %v1888_v52 }
0x1054   :  { %v1895_v0 = vadd.f32 %v2013_v56, %v1887_v53  ;;  %1898 = vst.msk [vmem:[#allocation2 + $0x8] sm:$0xff] %vm177_vm1, %v1896_v54 }
0x1056   :  { %1897 = vst.msk [vmem:[#allocation2] sm:$0xff] %vm177_vm1, %v1895_v0 }
0x1057   :  { %2393 = shalt.err (!%p2390_p4)
}
0x1058   :  { %s2407_s14 = smov 128   ;;  %s2408_s3 = smov 8  }
0x1059   :  { %1910 = dma.vmem_to_hbm [thread:$0]  %s1905_s5, 256, %s3014_s17, [#allocation3], %s2407_s14, %s2407_s14, %s2408_s3  }
0x105a   :  { %2402 = dma.done.wait [#allocation3], 256  }
0x105b   :  { %2403 = vsyncadd [#allocation3], 4294967040 }
0x105c   :  { %1914 = vsyncpa [#allocation3], 1 }

</bundles_post_ra>
